<compile_context>
chip_gen: v6e
topology: v6e:2x2x1
jax: 0.10.0
libtpu: 0.0.40
codegen_flags: <defaults>
</compile_context>

<pallas_src>
import math

import jax
import jax.numpy as jnp
from jax import lax
from jax.experimental import pallas as pl
from jax.experimental.pallas import tpu as pltpu

# ----------------------------- configuration --------------------------------
VOCAB = 64        # synthetic vocab
MAX_POS = 16      # max positions
HIDDEN = 32       # config.hidden_size
NUM_HEADS = 2
HEAD_DIM = HIDDEN // NUM_HEADS
NUM_LAYERS = 2
FFN = 4 * HIDDEN
NUM_LABELS = 5    # config.num_labels (SST-5)
BATCH = 2
SEQ = 8
LN_EPS = 1e-5
NEG_INF = -1e30

# -------------------------- packed blob layout -------------------------------
_LANE = 128
# W_A (HIDDEN, 7*128): every weight matrix whose input dim is HIDDEN, each in a
# 128-aligned column block (aligned loads, no lane shuffles).
_WA_FC = (0 * _LANE, 1 * _LANE)      # per-layer w_fc   (H, FFN)
_WA_QKV = (2 * _LANE, 3 * _LANE)     # per-layer w_qkv  (H, 3H)
_WA_PO = (4 * _LANE, 5 * _LANE)      # per-layer w_po   (H, H)
_WA_HEAD = 6 * _LANE                 # classification head (H, NUM_LABELS)
WA_COLS = 7 * _LANE
# W_B (FFN, 3*128): FFN down-projections + [wte; wpe] embedding table.
_WB_OUT = (0 * _LANE, 1 * _LANE)     # per-layer w_out  (FFN, H)
_WB_EMB = 2 * _LANE                  # [wte; wpe] in rows [0 : VOCAB+MAX_POS)
WB_COLS = 3 * _LANE
# VECS (24, 128): one bias / LayerNorm vector per row, left-aligned.
(_V_LN1G, _V_LN1B, _V_BQKV, _V_BPO,
 _V_LN2G, _V_LN2B, _V_BFC, _V_BOUT) = range(8)
_V_PER_LAYER = 8
_V_LNFG = NUM_LAYERS * _V_PER_LAYER
_V_LNFB = _V_LNFG + 1
_V_BHEAD = _V_LNFG + 2
V_ROWS = 24


def _split_flat(idx, seq):
    """flat token index -> (batch, position); shift/mask when seq is a pow2."""
    if seq & (seq - 1) == 0:
        sh = seq.bit_length() - 1
        return idx >> sh, idx & (seq - 1)
    return idx // seq, jnp.remainder(idx, seq)


# ------------------------------ fused Pallas kernel --------------------------
def _fused_gpt2_kernel(
    lens_ref,                 # scalar prefetch (SMEM): (B,) int32
    ids_ref,                  # (B*S, 1) int32 flattened input_ids
    w_a_ref,                  # (HIDDEN, WA_COLS) f32
    w_b_ref,                  # (FFN, WB_COLS) f32
    v_ref,                    # (V_ROWS, 128) f32 biases / LN params
    o_ref,                    # out: (B, NUM_LABELS) f32
):
    bs = ids_ref.shape[0]
    batch = lens_ref.shape[0]
    seq = bs // batch
    scale = 1.0 / math.sqrt(HEAD_DIM)

    def vec(row, width):      # (1, width) view of a bias/LN row
        return v_ref[row:row + 1, 0:width]

    def layer_norm(v, g, b):
        mu = jnp.mean(v, axis=-1, keepdims=True)
        vc = v - mu
        var = jnp.mean(vc * vc, axis=-1, keepdims=True)
        return vc * lax.rsqrt(var + LN_EPS) * g + b

    # ---- embeddings: one-hot(token ⊕ position) @ [wte; wpe]  (single MXU op) ----
    ids = ids_ref[...]                                               # (BS, 1)
    emb_rows = VOCAB + MAX_POS
    col_e = lax.broadcasted_iota(jnp.int32, (bs, emb_rows), 1)
    tok = lax.broadcasted_iota(jnp.int32, (bs, emb_rows), 0)
    _, pos = _split_flat(tok, seq)
    sel = jnp.where((col_e == ids) | (col_e == VOCAB + pos), 1.0, 0.0)
    emb = w_b_ref[0:emb_rows, _WB_EMB:_WB_EMB + HIDDEN]              # (80, H)
    x = jnp.dot(sel, emb, preferred_element_type=jnp.float32)        # (BS, H)

    # ---- additive attention bias: same-batch AND causal AND key-not-pad ----
    # NOTE: assumes right-padded (contiguous left-aligned) attention masks.
    ri = lax.broadcasted_iota(jnp.int32, (bs, bs), 0)
    ci = lax.broadcasted_iota(jnp.int32, (bs, bs), 1)
    row_b, row_p = _split_flat(ri, seq)
    col_b, col_p = _split_flat(ci, seq)
    allowed = (row_b == col_b) & (col_p <= row_p)
    key_ok = (col_b == 0) & (col_p < lens_ref[0])
    for b in range(1, batch):                                        # static unroll
        key_ok = key_ok | ((col_b == b) & (col_p < lens_ref[b]))
    bias = jnp.where(allowed & key_ok, 0.0, NEG_INF)                 # (BS, BS)

    # ---- transformer layers (static unroll, 2 layers) ----
    for l in range(NUM_LAYERS):
        base = l * _V_PER_LAYER
        # attention block (pre-LN), fused QKV + fused output projection
        h1 = layer_norm(x, vec(base + _V_LN1G, HIDDEN), vec(base + _V_LN1B, HIDDEN))
        w_qkv = w_a_ref[:, _WA_QKV[l]:_WA_QKV[l] + 3 * HIDDEN]
        qkv = (jnp.dot(h1, w_qkv, preferred_element_type=jnp.float32)
               + vec(base + _V_BQKV, 3 * HIDDEN))                    # (BS, 3H)
        heads = []
        for h in range(NUM_HEADS):                                   # static unroll
            q = qkv[:, h * HEAD_DIM:(h + 1) * HEAD_DIM]
            k = qkv[:, HIDDEN + h * HEAD_DIM:HIDDEN + (h + 1) * HEAD_DIM]
            v = qkv[:, 2 * HIDDEN + h * HEAD_DIM:2 * HIDDEN + (h + 1) * HEAD_DIM]
            s = lax.dot_general(q, k, (((1,), (1,)), ((), ())),
                                preferred_element_type=jnp.float32) * scale + bias
            m = jnp.max(s, axis=-1, keepdims=True)
            e = jnp.exp(s - m)
            p = e / jnp.sum(e, axis=-1, keepdims=True)               # exact softmax
            heads.append(jnp.dot(p, v, preferred_element_type=jnp.float32))
        attn = jnp.concatenate(heads, axis=-1)                       # (BS, H)
        w_po = w_a_ref[:, _WA_PO[l]:_WA_PO[l] + HIDDEN]
        x = (x + jnp.dot(attn, w_po, preferred_element_type=jnp.float32)
             + vec(base + _V_BPO, HIDDEN))

        # MLP block (pre-LN)
        h2 = layer_norm(x, vec(base + _V_LN2G, HIDDEN), vec(base + _V_LN2B, HIDDEN))
        w_fc = w_a_ref[:, _WA_FC[l]:_WA_FC[l] + FFN]
        f = jnp.dot(h2, w_fc, preferred_element_type=jnp.float32) + vec(base + _V_BFC, FFN)
        f = jax.nn.gelu(f, approximate=True)                         # GPT-2 tanh GELU
        w_out = w_b_ref[:, _WB_OUT[l]:_WB_OUT[l] + HIDDEN]
        x = (x + jnp.dot(f, w_out, preferred_element_type=jnp.float32)
             + vec(base + _V_BOUT, HIDDEN))

    # ---- final LayerNorm + last-token one-hot gather + classification head ----
    xf = layer_norm(x, vec(_V_LNFG, HIDDEN), vec(_V_LNFB, HIDDEN))
    rb = lax.broadcasted_iota(jnp.int32, (batch, bs), 0)
    ct = lax.broadcasted_iota(jnp.int32, (batch, bs), 1)
    idx0 = jnp.maximum(lens_ref[0] - 1, 0)                           # clamp lens==0
    cond = (rb == 0) & (ct == idx0)
    for b in range(1, batch):                                        # static unroll
        idx_b = b * seq + jnp.maximum(lens_ref[b] - 1, 0)
        cond = cond | ((rb == b) & (ct == idx_b))
    sel_last = jnp.where(cond, 1.0, 0.0)                             # (B, BS)
    x_last = jnp.dot(sel_last, xf, preferred_element_type=jnp.float32)  # (B, H)
    # dropout = identity in eval mode
    w_head = w_a_ref[:, _WA_HEAD:_WA_HEAD + NUM_LABELS]
    o_ref[...] = (jnp.dot(x_last, w_head, preferred_element_type=jnp.float32)
                  + vec(_V_BHEAD, NUM_LABELS))


def _full_spec(shape):
    nd = len(shape)
    return pl.BlockSpec(shape, lambda i, lens, nd=nd: (0,) * nd)


# ------------------------------ model glue -----------------------------------
def init_params(key):
    """Deterministic synthetic GPT-2-small-shaped weights, packed into blobs."""
    L, H, F_, NL = NUM_LAYERS, HIDDEN, FFN, NUM_LABELS
    keys = iter(jax.random.split(key, 10))

    def nrm(shape, scale=0.02):
        return (scale * jax.random.normal(next(keys), shape)).astype(jnp.float32)

    wte = nrm((VOCAB, H)); wpe = nrm((MAX_POS, H))
    w_qkv = nrm((L, H, 3 * H)); b_qkv = jnp.zeros((L, 3 * H), jnp.float32)
    w_po = nrm((L, H, H));      b_po = jnp.zeros((L, H), jnp.float32)
    w_fc = nrm((L, H, F_));     b_fc = jnp.zeros((L, F_), jnp.float32)
    w_out = nrm((L, F_, H));    b_out = jnp.zeros((L, H), jnp.float32)
    ln1_g = jnp.ones((L, H), jnp.float32); ln1_b = jnp.zeros((L, H), jnp.float32)
    ln2_g = jnp.ones((L, H), jnp.float32); ln2_b = jnp.zeros((L, H), jnp.float32)
    lnf_g = jnp.ones((H,), jnp.float32);   lnf_b = jnp.zeros((H,), jnp.float32)
    w_head = nrm((H, NL));      b_head = jnp.zeros((NL,), jnp.float32)

    # ---- pack into lane-dense blobs (once at init, outside the forward path) ----
    w_a = jnp.zeros((H, WA_COLS), jnp.float32)
    for l in range(L):
        w_a = w_a.at[:, _WA_FC[l]:_WA_FC[l] + F_].set(w_fc[l])
        w_a = w_a.at[:, _WA_QKV[l]:_WA_QKV[l] + 3 * H].set(w_qkv[l])
        w_a = w_a.at[:, _WA_PO[l]:_WA_PO[l] + H].set(w_po[l])
    w_a = w_a.at[:, _WA_HEAD:_WA_HEAD + NL].set(w_head)

    w_b = jnp.zeros((F_, WB_COLS), jnp.float32)
    for l in range(L):
        w_b = w_b.at[:, _WB_OUT[l]:_WB_OUT[l] + H].set(w_out[l])
    w_b = w_b.at[0:VOCAB, _WB_EMB:_WB_EMB + H].set(wte)
    w_b = w_b.at[VOCAB:VOCAB + MAX_POS, _WB_EMB:_WB_EMB + H].set(wpe)

    def row(v):
        return jnp.zeros((_LANE,), jnp.float32).at[:v.shape[0]].set(v)

    rows = []
    for l in range(L):
        rows += [row(ln1_g[l]), row(ln1_b[l]), row(b_qkv[l]), row(b_po[l]),
                 row(ln2_g[l]), row(ln2_b[l]), row(b_fc[l]), row(b_out[l])]
    rows += [row(lnf_g), row(lnf_b), row(b_head)]
    while len(rows) < V_ROWS:
        rows.append(jnp.zeros((_LANE,), jnp.float32))
    vecs = jnp.stack(rows, axis=0)

    return {"w_a": w_a, "w_b": w_b, "vecs": vecs}


@jax.jit
def gpt2_sentiment_classifier_forward(params, input_ids, attention_mask):
    """Equivalent of GPT2SentimentClassifier.forward (inference)."""
    B, S = input_ids.shape
    BS = B * S

    # index of last non-pad token per sequence (assumes right-padded masks)
    lens = jnp.sum(attention_mask, axis=-1).astype(jnp.int32)
    ids_col = input_ids.reshape(BS, 1).astype(jnp.int32)

    operands = (ids_col, params["w_a"], params["w_b"], params["vecs"])

    # Advisory cost estimate for XLA's scheduler around the custom call.
    mm = 2 * BS * (VOCAB + MAX_POS) * HIDDEN                     # embedding one-hot
    for _ in range(NUM_LAYERS):
        mm += 2 * BS * HIDDEN * 3 * HIDDEN                       # fused QKV
        mm += NUM_HEADS * 2 * (2 * BS * BS * HEAD_DIM)           # scores + PV
        mm += 2 * BS * HIDDEN * HIDDEN                           # fused out-proj
        mm += 2 * BS * HIDDEN * FFN + 2 * BS * FFN * HIDDEN      # MLP
    mm += 2 * B * BS * HIDDEN + 2 * B * HIDDEN * NUM_LABELS      # gather + head
    transc = NUM_LAYERS * (NUM_HEADS * BS * BS + BS * FFN) + (2 * NUM_LAYERS + 1) * BS
    nbytes = (sum(int(o.size) * o.dtype.itemsize for o in operands)
              + int(lens.size) * 4 + B * NUM_LABELS * 4)

    logits = pl.pallas_call(
        _fused_gpt2_kernel,
        out_shape=jax.ShapeDtypeStruct((B, NUM_LABELS), jnp.float32),
        grid_spec=pltpu.PrefetchScalarGridSpec(
            num_scalar_prefetch=1,
            grid=(1,),
            in_specs=[_full_spec(op.shape) for op in operands],
            out_specs=_full_spec((B, NUM_LABELS)),
        ),
        compiler_params=pltpu.CompilerParams(
            dimension_semantics=("arbitrary",)),
        cost_estimate=pl.CostEstimate(flops=mm, transcendentals=transc,
                                      bytes_accessed=nbytes),
    )(lens, *operands)
    return logits


# --------------------------------- main ---------------------------------------
if __name__ == "__main__":
    key = jax.random.PRNGKey(0)
    k_params, k_ids = jax.random.split(key)

    params = init_params(k_params)
    input_ids = jax.random.randint(k_ids, (BATCH, SEQ), 0, VOCAB, dtype=jnp.int32)
    attention_mask = jnp.array(
        [[1, 1, 1, 1, 1, 1, 1, 1],
         [1, 1, 1, 1, 1, 0, 0, 0]], dtype=jnp.int32)

    logits = gpt2_sentiment_classifier_forward(params, input_ids, attention_mask)
    logits = jax.block_until_ready(logits)
    assert logits.shape == (BATCH, NUM_LABELS) and logits.dtype == jnp.float32
    assert bool(jnp.all(jnp.isfinite(logits)))
    print("KERNEL_OK")
</pallas_src>

<mosaic_0001>
module attributes {stable_mosaic.version = 11 : i64} {
  func.func @_fused_gpt2_kernel(%arg0: i32, %arg1: memref<2xi32, #tpu.memory_space<smem>>, %arg2: memref<16x1xi32, #tpu.memory_space<vmem>>, %arg3: memref<32x896xf32, #tpu.memory_space<vmem>>, %arg4: memref<128x384xf32, #tpu.memory_space<vmem>>, %arg5: memref<24x128xf32, #tpu.memory_space<vmem>>, %arg6: memref<2x5xf32, #tpu.memory_space<vmem>>) attributes {dimension_semantics = [#tpu.dimension_semantics<arbitrary>], iteration_bounds = array<i64: 1>, scalar_prefetch = 1 : i64, scratch_operands = 0 : i64, tpu.core_type = #tpu.core_type<tc>, window_params = [{pipeline_mode = #tpu.pipeline_mode<synchronous>, transform_indices = @transform_0, window_bounds = array<i64: 16, 1>}, {pipeline_mode = #tpu.pipeline_mode<synchronous>, transform_indices = @transform_1, window_bounds = array<i64: 32, 896>}, {pipeline_mode = #tpu.pipeline_mode<synchronous>, transform_indices = @transform_2, window_bounds = array<i64: 128, 384>}, {pipeline_mode = #tpu.pipeline_mode<synchronous>, transform_indices = @transform_3, window_bounds = array<i64: 24, 128>}, {pipeline_mode = #tpu.pipeline_mode<synchronous>, transform_indices = @transform_4, window_bounds = array<i64: 2, 5>}]} {
    %c0 = arith.constant 0 : index
    %c0_0 = arith.constant 0 : index
    %0 = vector.load %arg2[%c0, %c0_0] : memref<16x1xi32, #tpu.memory_space<vmem>>, vector<16x1xi32>
    %1 = tpu.iota {dimensions = array<i32: 1>} : vector<16x80xi32>
    %2 = tpu.iota {dimensions = array<i32: 0>} : vector<16x80xi32>
    %c7_i32 = arith.constant 7 : i32
    %3 = vector.broadcast %c7_i32 : i32 to vector<16x80xi32>
    %4 = arith.andi %2, %3 : vector<16x80xi32>
    %5 = vector.broadcast %0 : vector<16x1xi32> to vector<16x80xi32>
    %6 = arith.cmpi eq, %1, %5 : vector<16x80xi32>
    %c64_i32 = arith.constant 64 : i32
    %7 = vector.broadcast %c64_i32 : i32 to vector<16x80xi32>
    %8 = arith.addi %7, %4 : vector<16x80xi32>
    %9 = arith.cmpi eq, %1, %8 : vector<16x80xi32>
    %10 = arith.ori %6, %9 : vector<16x80xi1>
    %cst = arith.constant 1.000000e+00 : f32
    %cst_1 = arith.constant 0.000000e+00 : f32
    %11 = vector.broadcast %cst : f32 to vector<16x80xf32>
    %12 = vector.broadcast %cst_1 : f32 to vector<16x80xf32>
    %13 = arith.select %10, %11, %12 : vector<16x80xi1>, vector<16x80xf32>
    %c0_2 = arith.constant 0 : index
    %c256 = arith.constant 256 : index
    %14 = vector.load %arg4[%c0_2, %c256] : memref<128x384xf32, #tpu.memory_space<vmem>>, vector<80x32xf32>
    %cst_3 = arith.constant dense<0.000000e+00> : vector<16x32xf32>
    %15 = tpu.matmul %13, %14, %cst_3 {dimension_numbers = #tpu.dot_dimension_numbers<[1], [0], [0], [1], [0, 0, 1, 1], [], []>} : vector<16x80xf32>, vector<80x32xf32>, vector<16x32xf32> -> vector<16x32xf32>
    %16 = tpu.iota {dimensions = array<i32: 0>} : vector<16x16xi32>
    %17 = tpu.iota {dimensions = array<i32: 1>} : vector<16x16xi32>
    %c3_i32 = arith.constant 3 : i32
    %18 = vector.broadcast %c3_i32 : i32 to vector<16x16xi32>
    %19 = arith.shrsi %16, %18 : vector<16x16xi32>
    %c7_i32_4 = arith.constant 7 : i32
    %20 = vector.broadcast %c7_i32_4 : i32 to vector<16x16xi32>
    %21 = arith.andi %16, %20 : vector<16x16xi32>
    %c3_i32_5 = arith.constant 3 : i32
    %22 = vector.broadcast %c3_i32_5 : i32 to vector<16x16xi32>
    %23 = arith.shrsi %17, %22 : vector<16x16xi32>
    %c7_i32_6 = arith.constant 7 : i32
    %24 = vector.broadcast %c7_i32_6 : i32 to vector<16x16xi32>
    %25 = arith.andi %17, %24 : vector<16x16xi32>
    %26 = arith.cmpi eq, %19, %23 : vector<16x16xi32>
    %27 = arith.cmpi sle, %25, %21 : vector<16x16xi32>
    %28 = arith.andi %26, %27 : vector<16x16xi1>
    %c0_i32 = arith.constant 0 : i32
    %29 = vector.broadcast %c0_i32 : i32 to vector<16x16xi32>
    %30 = arith.cmpi eq, %23, %29 : vector<16x16xi32>
    %c0_7 = arith.constant 0 : index
    %31 = memref.load %arg1[%c0_7] : memref<2xi32, #tpu.memory_space<smem>>
    %32 = vector.broadcast %31 : i32 to vector<16x16xi32>
    %33 = arith.cmpi slt, %25, %32 : vector<16x16xi32>
    %34 = arith.andi %30, %33 : vector<16x16xi1>
    %c1_i32 = arith.constant 1 : i32
    %35 = vector.broadcast %c1_i32 : i32 to vector<16x16xi32>
    %36 = arith.cmpi eq, %23, %35 : vector<16x16xi32>
    %c1 = arith.constant 1 : index
    %37 = memref.load %arg1[%c1] : memref<2xi32, #tpu.memory_space<smem>>
    %38 = vector.broadcast %37 : i32 to vector<16x16xi32>
    %39 = arith.cmpi slt, %25, %38 : vector<16x16xi32>
    %40 = arith.andi %36, %39 : vector<16x16xi1>
    %41 = arith.ori %34, %40 : vector<16x16xi1>
    %42 = arith.andi %28, %41 : vector<16x16xi1>
    %cst_8 = arith.constant 0.000000e+00 : f32
    %cst_9 = arith.constant -1.000000e+30 : f32
    %43 = vector.broadcast %cst_8 : f32 to vector<16x16xf32>
    %44 = vector.broadcast %cst_9 : f32 to vector<16x16xf32>
    %45 = arith.select %42, %43, %44 : vector<16x16xi1>, vector<16x16xf32>
    %c0_10 = arith.constant 0 : index
    %c0_11 = arith.constant 0 : index
    %46 = vector.load %arg5[%c0_10, %c0_11] : memref<24x128xf32, #tpu.memory_space<vmem>>, vector<1x32xf32>
    %c1_12 = arith.constant 1 : index
    %c0_13 = arith.constant 0 : index
    %47 = vector.load %arg5[%c1_12, %c0_13] : memref<24x128xf32, #tpu.memory_space<vmem>>, vector<1x32xf32>
    %cst_14 = arith.constant dense<0.000000e+00> : vector<16xf32>
    %48 = vector.multi_reduction <add>, %15, %cst_14 [1] : vector<16x32xf32> to vector<16xf32>
    %49 = vector.shape_cast %48 : vector<16xf32> to vector<16x1xf32>
    %cst_15 = arith.constant 3.200000e+01 : f32
    %50 = vector.broadcast %cst_15 : f32 to vector<16x1xf32>
    %51 = arith.divf %49, %50 : vector<16x1xf32>
    %52 = vector.broadcast %51 : vector<16x1xf32> to vector<16x32xf32>
    %53 = arith.subf %15, %52 : vector<16x32xf32>
    %54 = arith.mulf %53, %53 : vector<16x32xf32>
    %cst_16 = arith.constant dense<0.000000e+00> : vector<16xf32>
    %55 = vector.multi_reduction <add>, %54, %cst_16 [1] : vector<16x32xf32> to vector<16xf32>
    %56 = vector.shape_cast %55 : vector<16xf32> to vector<16x1xf32>
    %cst_17 = arith.constant 3.200000e+01 : f32
    %57 = vector.broadcast %cst_17 : f32 to vector<16x1xf32>
    %58 = arith.divf %56, %57 : vector<16x1xf32>
    %cst_18 = arith.constant 9.99999974E-6 : f32
    %59 = vector.broadcast %cst_18 : f32 to vector<16x1xf32>
    %60 = arith.addf %58, %59 : vector<16x1xf32>
    %61 = math.rsqrt %60 : vector<16x1xf32>
    %62 = vector.broadcast %61 : vector<16x1xf32> to vector<16x32xf32>
    %63 = arith.mulf %53, %62 : vector<16x32xf32>
    %64 = vector.broadcast %46 : vector<1x32xf32> to vector<16x32xf32>
    %65 = arith.mulf %63, %64 : vector<16x32xf32>
    %66 = vector.broadcast %47 : vector<1x32xf32> to vector<16x32xf32>
    %67 = arith.addf %65, %66 : vector<16x32xf32>
    %c0_19 = arith.constant 0 : index
    %c256_20 = arith.constant 256 : index
    %68 = vector.load %arg3[%c0_19, %c256_20] : memref<32x896xf32, #tpu.memory_space<vmem>>, vector<32x96xf32>
    %cst_21 = arith.constant dense<0.000000e+00> : vector<16x96xf32>
    %69 = tpu.matmul %67, %68, %cst_21 {dimension_numbers = #tpu.dot_dimension_numbers<[1], [0], [0], [1], [0, 0, 1, 1], [], []>} : vector<16x32xf32>, vector<32x96xf32>, vector<16x96xf32> -> vector<16x96xf32>
    %c2 = arith.constant 2 : index
    %c0_22 = arith.constant 0 : index
    %70 = vector.load %arg5[%c2, %c0_22] : memref<24x128xf32, #tpu.memory_space<vmem>>, vector<1x96xf32>
    %71 = vector.broadcast %70 : vector<1x96xf32> to vector<16x96xf32>
    %72 = arith.addf %69, %71 : vector<16x96xf32>
    %73 = vector.extract_strided_slice %72 {offsets = [0, 0], sizes = [16, 16], strides = [1, 1]} : vector<16x96xf32> to vector<16x16xf32>
    %74 = vector.extract_strided_slice %72 {offsets = [0, 32], sizes = [16, 16], strides = [1, 1]} : vector<16x96xf32> to vector<16x16xf32>
    %75 = vector.extract_strided_slice %72 {offsets = [0, 64], sizes = [16, 16], strides = [1, 1]} : vector<16x96xf32> to vector<16x16xf32>
    %cst_23 = arith.constant dense<0.000000e+00> : vector<16x16xf32>
    %76 = tpu.matmul %73, %74, %cst_23 {dimension_numbers = #tpu.dot_dimension_numbers<[1], [1], [0], [0], [0, 0, 1, 0], [], []>} : vector<16x16xf32>, vector<16x16xf32>, vector<16x16xf32> -> vector<16x16xf32>
    %cst_24 = arith.constant 2.500000e-01 : f32
    %77 = vector.broadcast %cst_24 : f32 to vector<16x16xf32>
    %78 = arith.mulf %76, %77 : vector<16x16xf32>
    %79 = arith.addf %78, %45 : vector<16x16xf32>
    %cst_25 = arith.constant dense<0xFF800000> : vector<16xf32>
    %80 = vector.multi_reduction <maximumf>, %79, %cst_25 [1] : vector<16x16xf32> to vector<16xf32>
    %81 = vector.shape_cast %80 : vector<16xf32> to vector<16x1xf32>
    %82 = vector.broadcast %81 : vector<16x1xf32> to vector<16x16xf32>
    %83 = arith.subf %79, %82 : vector<16x16xf32>
    %84 = math.exp %83 : vector<16x16xf32>
    %cst_26 = arith.constant dense<0.000000e+00> : vector<16xf32>
    %85 = vector.multi_reduction <add>, %84, %cst_26 [1] : vector<16x16xf32> to vector<16xf32>
    %86 = vector.shape_cast %85 : vector<16xf32> to vector<16x1xf32>
    %87 = vector.broadcast %86 : vector<16x1xf32> to vector<16x16xf32>
    %88 = arith.divf %84, %87 : vector<16x16xf32>
    %cst_27 = arith.constant dense<0.000000e+00> : vector<16x16xf32>
    %89 = tpu.matmul %88, %75, %cst_27 {dimension_numbers = #tpu.dot_dimension_numbers<[1], [0], [0], [1], [0, 0, 1, 1], [], []>} : vector<16x16xf32>, vector<16x16xf32>, vector<16x16xf32> -> vector<16x16xf32>
    %90 = vector.extract_strided_slice %72 {offsets = [0, 16], sizes = [16, 16], strides = [1, 1]} : vector<16x96xf32> to vector<16x16xf32>
    %91 = vector.extract_strided_slice %72 {offsets = [0, 48], sizes = [16, 16], strides = [1, 1]} : vector<16x96xf32> to vector<16x16xf32>
    %92 = vector.extract_strided_slice %72 {offsets = [0, 80], sizes = [16, 16], strides = [1, 1]} : vector<16x96xf32> to vector<16x16xf32>
    %cst_28 = arith.constant dense<0.000000e+00> : vector<16x16xf32>
    %93 = tpu.matmul %90, %91, %cst_28 {dimension_numbers = #tpu.dot_dimension_numbers<[1], [1], [0], [0], [0, 0, 1, 0], [], []>} : vector<16x16xf32>, vector<16x16xf32>, vector<16x16xf32> -> vector<16x16xf32>
    %cst_29 = arith.constant 2.500000e-01 : f32
    %94 = vector.broadcast %cst_29 : f32 to vector<16x16xf32>
    %95 = arith.mulf %93, %94 : vector<16x16xf32>
    %96 = arith.addf %95, %45 : vector<16x16xf32>
    %cst_30 = arith.constant dense<0xFF800000> : vector<16xf32>
    %97 = vector.multi_reduction <maximumf>, %96, %cst_30 [1] : vector<16x16xf32> to vector<16xf32>
    %98 = vector.shape_cast %97 : vector<16xf32> to vector<16x1xf32>
    %99 = vector.broadcast %98 : vector<16x1xf32> to vector<16x16xf32>
    %100 = arith.subf %96, %99 : vector<16x16xf32>
    %101 = math.exp %100 : vector<16x16xf32>
    %cst_31 = arith.constant dense<0.000000e+00> : vector<16xf32>
    %102 = vector.multi_reduction <add>, %101, %cst_31 [1] : vector<16x16xf32> to vector<16xf32>
    %103 = vector.shape_cast %102 : vector<16xf32> to vector<16x1xf32>
    %104 = vector.broadcast %103 : vector<16x1xf32> to vector<16x16xf32>
    %105 = arith.divf %101, %104 : vector<16x16xf32>
    %cst_32 = arith.constant dense<0.000000e+00> : vector<16x16xf32>
    %106 = tpu.matmul %105, %92, %cst_32 {dimension_numbers = #tpu.dot_dimension_numbers<[1], [0], [0], [1], [0, 0, 1, 1], [], []>} : vector<16x16xf32>, vector<16x16xf32>, vector<16x16xf32> -> vector<16x16xf32>
    %107 = tpu.concatenate %89, %106 in 1 : vector<16x16xf32>, vector<16x16xf32> -> vector<16x32xf32>
    %c0_33 = arith.constant 0 : index
    %c512 = arith.constant 512 : index
    %108 = vector.load %arg3[%c0_33, %c512] : memref<32x896xf32, #tpu.memory_space<vmem>>, vector<32x32xf32>
    %cst_34 = arith.constant dense<0.000000e+00> : vector<16x32xf32>
    %109 = tpu.matmul %107, %108, %cst_34 {dimension_numbers = #tpu.dot_dimension_numbers<[1], [0], [0], [1], [0, 0, 1, 1], [], []>} : vector<16x32xf32>, vector<32x32xf32>, vector<16x32xf32> -> vector<16x32xf32>
    %110 = arith.addf %15, %109 : vector<16x32xf32>
    %c3 = arith.constant 3 : index
    %c0_35 = arith.constant 0 : index
    %111 = vector.load %arg5[%c3, %c0_35] : memref<24x128xf32, #tpu.memory_space<vmem>>, vector<1x32xf32>
    %112 = vector.broadcast %111 : vector<1x32xf32> to vector<16x32xf32>
    %113 = arith.addf %110, %112 : vector<16x32xf32>
    %c4 = arith.constant 4 : index
    %c0_36 = arith.constant 0 : index
    %114 = vector.load %arg5[%c4, %c0_36] : memref<24x128xf32, #tpu.memory_space<vmem>>, vector<1x32xf32>
    %c5 = arith.constant 5 : index
    %c0_37 = arith.constant 0 : index
    %115 = vector.load %arg5[%c5, %c0_37] : memref<24x128xf32, #tpu.memory_space<vmem>>, vector<1x32xf32>
    %cst_38 = arith.constant dense<0.000000e+00> : vector<16xf32>
    %116 = vector.multi_reduction <add>, %113, %cst_38 [1] : vector<16x32xf32> to vector<16xf32>
    %117 = vector.shape_cast %116 : vector<16xf32> to vector<16x1xf32>
    %cst_39 = arith.constant 3.200000e+01 : f32
    %118 = vector.broadcast %cst_39 : f32 to vector<16x1xf32>
    %119 = arith.divf %117, %118 : vector<16x1xf32>
    %120 = vector.broadcast %119 : vector<16x1xf32> to vector<16x32xf32>
    %121 = arith.subf %113, %120 : vector<16x32xf32>
    %122 = arith.mulf %121, %121 : vector<16x32xf32>
    %cst_40 = arith.constant dense<0.000000e+00> : vector<16xf32>
    %123 = vector.multi_reduction <add>, %122, %cst_40 [1] : vector<16x32xf32> to vector<16xf32>
    %124 = vector.shape_cast %123 : vector<16xf32> to vector<16x1xf32>
    %cst_41 = arith.constant 3.200000e+01 : f32
    %125 = vector.broadcast %cst_41 : f32 to vector<16x1xf32>
    %126 = arith.divf %124, %125 : vector<16x1xf32>
    %cst_42 = arith.constant 9.99999974E-6 : f32
    %127 = vector.broadcast %cst_42 : f32 to vector<16x1xf32>
    %128 = arith.addf %126, %127 : vector<16x1xf32>
    %129 = math.rsqrt %128 : vector<16x1xf32>
    %130 = vector.broadcast %129 : vector<16x1xf32> to vector<16x32xf32>
    %131 = arith.mulf %121, %130 : vector<16x32xf32>
    %132 = vector.broadcast %114 : vector<1x32xf32> to vector<16x32xf32>
    %133 = arith.mulf %131, %132 : vector<16x32xf32>
    %134 = vector.broadcast %115 : vector<1x32xf32> to vector<16x32xf32>
    %135 = arith.addf %133, %134 : vector<16x32xf32>
    %c0_43 = arith.constant 0 : index
    %c0_44 = arith.constant 0 : index
    %136 = vector.load %arg3[%c0_43, %c0_44] : memref<32x896xf32, #tpu.memory_space<vmem>>, vector<32x128xf32>
    %cst_45 = arith.constant dense<0.000000e+00> : vector<16x128xf32>
    %137 = tpu.matmul %135, %136, %cst_45 {dimension_numbers = #tpu.dot_dimension_numbers<[1], [0], [0], [1], [0, 0, 1, 1], [], []>} : vector<16x32xf32>, vector<32x128xf32>, vector<16x128xf32> -> vector<16x128xf32>
    %c6 = arith.constant 6 : index
    %c0_46 = arith.constant 0 : index
    %138 = vector.load %arg5[%c6, %c0_46] : memref<24x128xf32, #tpu.memory_space<vmem>>, vector<1x128xf32>
    %139 = vector.broadcast %138 : vector<1x128xf32> to vector<16x128xf32>
    %140 = arith.addf %137, %139 : vector<16x128xf32>
    %141 = arith.mulf %140, %140 : vector<16x128xf32>
    %142 = arith.mulf %140, %141 : vector<16x128xf32>
    %cst_47 = arith.constant 4.471500e-02 : f32
    %143 = vector.broadcast %cst_47 : f32 to vector<16x128xf32>
    %144 = arith.mulf %143, %142 : vector<16x128xf32>
    %145 = arith.addf %140, %144 : vector<16x128xf32>
    %cst_48 = arith.constant 0.797884583 : f32
    %146 = vector.broadcast %cst_48 : f32 to vector<16x128xf32>
    %147 = arith.mulf %146, %145 : vector<16x128xf32>
    %148 = math.tanh %147 : vector<16x128xf32>
    %cst_49 = arith.constant 1.000000e+00 : f32
    %149 = vector.broadcast %cst_49 : f32 to vector<16x128xf32>
    %150 = arith.addf %149, %148 : vector<16x128xf32>
    %cst_50 = arith.constant 5.000000e-01 : f32
    %151 = vector.broadcast %cst_50 : f32 to vector<16x128xf32>
    %152 = arith.mulf %151, %150 : vector<16x128xf32>
    %153 = arith.mulf %140, %152 : vector<16x128xf32>
    %c0_51 = arith.constant 0 : index
    %c0_52 = arith.constant 0 : index
    %154 = vector.load %arg4[%c0_51, %c0_52] : memref<128x384xf32, #tpu.memory_space<vmem>>, vector<128x32xf32>
    %cst_53 = arith.constant dense<0.000000e+00> : vector<16x32xf32>
    %155 = tpu.matmul %153, %154, %cst_53 {dimension_numbers = #tpu.dot_dimension_numbers<[1], [0], [0], [1], [0, 0, 1, 1], [], []>} : vector<16x128xf32>, vector<128x32xf32>, vector<16x32xf32> -> vector<16x32xf32>
    %156 = arith.addf %113, %155 : vector<16x32xf32>
    %c7 = arith.constant 7 : index
    %c0_54 = arith.constant 0 : index
    %157 = vector.load %arg5[%c7, %c0_54] : memref<24x128xf32, #tpu.memory_space<vmem>>, vector<1x32xf32>
    %158 = vector.broadcast %157 : vector<1x32xf32> to vector<16x32xf32>
    %159 = arith.addf %156, %158 : vector<16x32xf32>
    %c8 = arith.constant 8 : index
    %c0_55 = arith.constant 0 : index
    %160 = vector.load %arg5[%c8, %c0_55] : memref<24x128xf32, #tpu.memory_space<vmem>>, vector<1x32xf32>
    %c9 = arith.constant 9 : index
    %c0_56 = arith.constant 0 : index
    %161 = vector.load %arg5[%c9, %c0_56] : memref<24x128xf32, #tpu.memory_space<vmem>>, vector<1x32xf32>
    %cst_57 = arith.constant dense<0.000000e+00> : vector<16xf32>
    %162 = vector.multi_reduction <add>, %159, %cst_57 [1] : vector<16x32xf32> to vector<16xf32>
    %163 = vector.shape_cast %162 : vector<16xf32> to vector<16x1xf32>
    %cst_58 = arith.constant 3.200000e+01 : f32
    %164 = vector.broadcast %cst_58 : f32 to vector<16x1xf32>
    %165 = arith.divf %163, %164 : vector<16x1xf32>
    %166 = vector.broadcast %165 : vector<16x1xf32> to vector<16x32xf32>
    %167 = arith.subf %159, %166 : vector<16x32xf32>
    %168 = arith.mulf %167, %167 : vector<16x32xf32>
    %cst_59 = arith.constant dense<0.000000e+00> : vector<16xf32>
    %169 = vector.multi_reduction <add>, %168, %cst_59 [1] : vector<16x32xf32> to vector<16xf32>
    %170 = vector.shape_cast %169 : vector<16xf32> to vector<16x1xf32>
    %cst_60 = arith.constant 3.200000e+01 : f32
    %171 = vector.broadcast %cst_60 : f32 to vector<16x1xf32>
    %172 = arith.divf %170, %171 : vector<16x1xf32>
    %cst_61 = arith.constant 9.99999974E-6 : f32
    %173 = vector.broadcast %cst_61 : f32 to vector<16x1xf32>
    %174 = arith.addf %172, %173 : vector<16x1xf32>
    %175 = math.rsqrt %174 : vector<16x1xf32>
    %176 = vector.broadcast %175 : vector<16x1xf32> to vector<16x32xf32>
    %177 = arith.mulf %167, %176 : vector<16x32xf32>
    %178 = vector.broadcast %160 : vector<1x32xf32> to vector<16x32xf32>
    %179 = arith.mulf %177, %178 : vector<16x32xf32>
    %180 = vector.broadcast %161 : vector<1x32xf32> to vector<16x32xf32>
    %181 = arith.addf %179, %180 : vector<16x32xf32>
    %c0_62 = arith.constant 0 : index
    %c384 = arith.constant 384 : index
    %182 = vector.load %arg3[%c0_62, %c384] : memref<32x896xf32, #tpu.memory_space<vmem>>, vector<32x96xf32>
    %cst_63 = arith.constant dense<0.000000e+00> : vector<16x96xf32>
    %183 = tpu.matmul %181, %182, %cst_63 {dimension_numbers = #tpu.dot_dimension_numbers<[1], [0], [0], [1], [0, 0, 1, 1], [], []>} : vector<16x32xf32>, vector<32x96xf32>, vector<16x96xf32> -> vector<16x96xf32>
    %c10 = arith.constant 10 : index
    %c0_64 = arith.constant 0 : index
    %184 = vector.load %arg5[%c10, %c0_64] : memref<24x128xf32, #tpu.memory_space<vmem>>, vector<1x96xf32>
    %185 = vector.broadcast %184 : vector<1x96xf32> to vector<16x96xf32>
    %186 = arith.addf %183, %185 : vector<16x96xf32>
    %187 = vector.extract_strided_slice %186 {offsets = [0, 0], sizes = [16, 16], strides = [1, 1]} : vector<16x96xf32> to vector<16x16xf32>
    %188 = vector.extract_strided_slice %186 {offsets = [0, 32], sizes = [16, 16], strides = [1, 1]} : vector<16x96xf32> to vector<16x16xf32>
    %189 = vector.extract_strided_slice %186 {offsets = [0, 64], sizes = [16, 16], strides = [1, 1]} : vector<16x96xf32> to vector<16x16xf32>
    %cst_65 = arith.constant dense<0.000000e+00> : vector<16x16xf32>
    %190 = tpu.matmul %187, %188, %cst_65 {dimension_numbers = #tpu.dot_dimension_numbers<[1], [1], [0], [0], [0, 0, 1, 0], [], []>} : vector<16x16xf32>, vector<16x16xf32>, vector<16x16xf32> -> vector<16x16xf32>
    %cst_66 = arith.constant 2.500000e-01 : f32
    %191 = vector.broadcast %cst_66 : f32 to vector<16x16xf32>
    %192 = arith.mulf %190, %191 : vector<16x16xf32>
    %193 = arith.addf %192, %45 : vector<16x16xf32>
    %cst_67 = arith.constant dense<0xFF800000> : vector<16xf32>
    %194 = vector.multi_reduction <maximumf>, %193, %cst_67 [1] : vector<16x16xf32> to vector<16xf32>
    %195 = vector.shape_cast %194 : vector<16xf32> to vector<16x1xf32>
    %196 = vector.broadcast %195 : vector<16x1xf32> to vector<16x16xf32>
    %197 = arith.subf %193, %196 : vector<16x16xf32>
    %198 = math.exp %197 : vector<16x16xf32>
    %cst_68 = arith.constant dense<0.000000e+00> : vector<16xf32>
    %199 = vector.multi_reduction <add>, %198, %cst_68 [1] : vector<16x16xf32> to vector<16xf32>
    %200 = vector.shape_cast %199 : vector<16xf32> to vector<16x1xf32>
    %201 = vector.broadcast %200 : vector<16x1xf32> to vector<16x16xf32>
    %202 = arith.divf %198, %201 : vector<16x16xf32>
    %cst_69 = arith.constant dense<0.000000e+00> : vector<16x16xf32>
    %203 = tpu.matmul %202, %189, %cst_69 {dimension_numbers = #tpu.dot_dimension_numbers<[1], [0], [0], [1], [0, 0, 1, 1], [], []>} : vector<16x16xf32>, vector<16x16xf32>, vector<16x16xf32> -> vector<16x16xf32>
    %204 = vector.extract_strided_slice %186 {offsets = [0, 16], sizes = [16, 16], strides = [1, 1]} : vector<16x96xf32> to vector<16x16xf32>
    %205 = vector.extract_strided_slice %186 {offsets = [0, 48], sizes = [16, 16], strides = [1, 1]} : vector<16x96xf32> to vector<16x16xf32>
    %206 = vector.extract_strided_slice %186 {offsets = [0, 80], sizes = [16, 16], strides = [1, 1]} : vector<16x96xf32> to vector<16x16xf32>
    %cst_70 = arith.constant dense<0.000000e+00> : vector<16x16xf32>
    %207 = tpu.matmul %204, %205, %cst_70 {dimension_numbers = #tpu.dot_dimension_numbers<[1], [1], [0], [0], [0, 0, 1, 0], [], []>} : vector<16x16xf32>, vector<16x16xf32>, vector<16x16xf32> -> vector<16x16xf32>
    %cst_71 = arith.constant 2.500000e-01 : f32
    %208 = vector.broadcast %cst_71 : f32 to vector<16x16xf32>
    %209 = arith.mulf %207, %208 : vector<16x16xf32>
    %210 = arith.addf %209, %45 : vector<16x16xf32>
    %cst_72 = arith.constant dense<0xFF800000> : vector<16xf32>
    %211 = vector.multi_reduction <maximumf>, %210, %cst_72 [1] : vector<16x16xf32> to vector<16xf32>
    %212 = vector.shape_cast %211 : vector<16xf32> to vector<16x1xf32>
    %213 = vector.broadcast %212 : vector<16x1xf32> to vector<16x16xf32>
    %214 = arith.subf %210, %213 : vector<16x16xf32>
    %215 = math.exp %214 : vector<16x16xf32>
    %cst_73 = arith.constant dense<0.000000e+00> : vector<16xf32>
    %216 = vector.multi_reduction <add>, %215, %cst_73 [1] : vector<16x16xf32> to vector<16xf32>
    %217 = vector.shape_cast %216 : vector<16xf32> to vector<16x1xf32>
    %218 = vector.broadcast %217 : vector<16x1xf32> to vector<16x16xf32>
    %219 = arith.divf %215, %218 : vector<16x16xf32>
    %cst_74 = arith.constant dense<0.000000e+00> : vector<16x16xf32>
    %220 = tpu.matmul %219, %206, %cst_74 {dimension_numbers = #tpu.dot_dimension_numbers<[1], [0], [0], [1], [0, 0, 1, 1], [], []>} : vector<16x16xf32>, vector<16x16xf32>, vector<16x16xf32> -> vector<16x16xf32>
    %221 = tpu.concatenate %203, %220 in 1 : vector<16x16xf32>, vector<16x16xf32> -> vector<16x32xf32>
    %c0_75 = arith.constant 0 : index
    %c640 = arith.constant 640 : index
    %222 = vector.load %arg3[%c0_75, %c640] : memref<32x896xf32, #tpu.memory_space<vmem>>, vector<32x32xf32>
    %cst_76 = arith.constant dense<0.000000e+00> : vector<16x32xf32>
    %223 = tpu.matmul %221, %222, %cst_76 {dimension_numbers = #tpu.dot_dimension_numbers<[1], [0], [0], [1], [0, 0, 1, 1], [], []>} : vector<16x32xf32>, vector<32x32xf32>, vector<16x32xf32> -> vector<16x32xf32>
    %224 = arith.addf %159, %223 : vector<16x32xf32>
    %c11 = arith.constant 11 : index
    %c0_77 = arith.constant 0 : index
    %225 = vector.load %arg5[%c11, %c0_77] : memref<24x128xf32, #tpu.memory_space<vmem>>, vector<1x32xf32>
    %226 = vector.broadcast %225 : vector<1x32xf32> to vector<16x32xf32>
    %227 = arith.addf %224, %226 : vector<16x32xf32>
    %c12 = arith.constant 12 : index
    %c0_78 = arith.constant 0 : index
    %228 = vector.load %arg5[%c12, %c0_78] : memref<24x128xf32, #tpu.memory_space<vmem>>, vector<1x32xf32>
    %c13 = arith.constant 13 : index
    %c0_79 = arith.constant 0 : index
    %229 = vector.load %arg5[%c13, %c0_79] : memref<24x128xf32, #tpu.memory_space<vmem>>, vector<1x32xf32>
    %cst_80 = arith.constant dense<0.000000e+00> : vector<16xf32>
    %230 = vector.multi_reduction <add>, %227, %cst_80 [1] : vector<16x32xf32> to vector<16xf32>
    %231 = vector.shape_cast %230 : vector<16xf32> to vector<16x1xf32>
    %cst_81 = arith.constant 3.200000e+01 : f32
    %232 = vector.broadcast %cst_81 : f32 to vector<16x1xf32>
    %233 = arith.divf %231, %232 : vector<16x1xf32>
    %234 = vector.broadcast %233 : vector<16x1xf32> to vector<16x32xf32>
    %235 = arith.subf %227, %234 : vector<16x32xf32>
    %236 = arith.mulf %235, %235 : vector<16x32xf32>
    %cst_82 = arith.constant dense<0.000000e+00> : vector<16xf32>
    %237 = vector.multi_reduction <add>, %236, %cst_82 [1] : vector<16x32xf32> to vector<16xf32>
    %238 = vector.shape_cast %237 : vector<16xf32> to vector<16x1xf32>
    %cst_83 = arith.constant 3.200000e+01 : f32
    %239 = vector.broadcast %cst_83 : f32 to vector<16x1xf32>
    %240 = arith.divf %238, %239 : vector<16x1xf32>
    %cst_84 = arith.constant 9.99999974E-6 : f32
    %241 = vector.broadcast %cst_84 : f32 to vector<16x1xf32>
    %242 = arith.addf %240, %241 : vector<16x1xf32>
    %243 = math.rsqrt %242 : vector<16x1xf32>
    %244 = vector.broadcast %243 : vector<16x1xf32> to vector<16x32xf32>
    %245 = arith.mulf %235, %244 : vector<16x32xf32>
    %246 = vector.broadcast %228 : vector<1x32xf32> to vector<16x32xf32>
    %247 = arith.mulf %245, %246 : vector<16x32xf32>
    %248 = vector.broadcast %229 : vector<1x32xf32> to vector<16x32xf32>
    %249 = arith.addf %247, %248 : vector<16x32xf32>
    %c0_85 = arith.constant 0 : index
    %c128 = arith.constant 128 : index
    %250 = vector.load %arg3[%c0_85, %c128] : memref<32x896xf32, #tpu.memory_space<vmem>>, vector<32x128xf32>
    %cst_86 = arith.constant dense<0.000000e+00> : vector<16x128xf32>
    %251 = tpu.matmul %249, %250, %cst_86 {dimension_numbers = #tpu.dot_dimension_numbers<[1], [0], [0], [1], [0, 0, 1, 1], [], []>} : vector<16x32xf32>, vector<32x128xf32>, vector<16x128xf32> -> vector<16x128xf32>
    %c14 = arith.constant 14 : index
    %c0_87 = arith.constant 0 : index
    %252 = vector.load %arg5[%c14, %c0_87] : memref<24x128xf32, #tpu.memory_space<vmem>>, vector<1x128xf32>
    %253 = vector.broadcast %252 : vector<1x128xf32> to vector<16x128xf32>
    %254 = arith.addf %251, %253 : vector<16x128xf32>
    %255 = arith.mulf %254, %254 : vector<16x128xf32>
    %256 = arith.mulf %254, %255 : vector<16x128xf32>
    %cst_88 = arith.constant 4.471500e-02 : f32
    %257 = vector.broadcast %cst_88 : f32 to vector<16x128xf32>
    %258 = arith.mulf %257, %256 : vector<16x128xf32>
    %259 = arith.addf %254, %258 : vector<16x128xf32>
    %cst_89 = arith.constant 0.797884583 : f32
    %260 = vector.broadcast %cst_89 : f32 to vector<16x128xf32>
    %261 = arith.mulf %260, %259 : vector<16x128xf32>
    %262 = math.tanh %261 : vector<16x128xf32>
    %cst_90 = arith.constant 1.000000e+00 : f32
    %263 = vector.broadcast %cst_90 : f32 to vector<16x128xf32>
    %264 = arith.addf %263, %262 : vector<16x128xf32>
    %cst_91 = arith.constant 5.000000e-01 : f32
    %265 = vector.broadcast %cst_91 : f32 to vector<16x128xf32>
    %266 = arith.mulf %265, %264 : vector<16x128xf32>
    %267 = arith.mulf %254, %266 : vector<16x128xf32>
    %c0_92 = arith.constant 0 : index
    %c128_93 = arith.constant 128 : index
    %268 = vector.load %arg4[%c0_92, %c128_93] : memref<128x384xf32, #tpu.memory_space<vmem>>, vector<128x32xf32>
    %cst_94 = arith.constant dense<0.000000e+00> : vector<16x32xf32>
    %269 = tpu.matmul %267, %268, %cst_94 {dimension_numbers = #tpu.dot_dimension_numbers<[1], [0], [0], [1], [0, 0, 1, 1], [], []>} : vector<16x128xf32>, vector<128x32xf32>, vector<16x32xf32> -> vector<16x32xf32>
    %270 = arith.addf %227, %269 : vector<16x32xf32>
    %c15 = arith.constant 15 : index
    %c0_95 = arith.constant 0 : index
    %271 = vector.load %arg5[%c15, %c0_95] : memref<24x128xf32, #tpu.memory_space<vmem>>, vector<1x32xf32>
    %272 = vector.broadcast %271 : vector<1x32xf32> to vector<16x32xf32>
    %273 = arith.addf %270, %272 : vector<16x32xf32>
    %c16 = arith.constant 16 : index
    %c0_96 = arith.constant 0 : index
    %274 = vector.load %arg5[%c16, %c0_96] : memref<24x128xf32, #tpu.memory_space<vmem>>, vector<1x32xf32>
    %c17 = arith.constant 17 : index
    %c0_97 = arith.constant 0 : index
    %275 = vector.load %arg5[%c17, %c0_97] : memref<24x128xf32, #tpu.memory_space<vmem>>, vector<1x32xf32>
    %cst_98 = arith.constant dense<0.000000e+00> : vector<16xf32>
    %276 = vector.multi_reduction <add>, %273, %cst_98 [1] : vector<16x32xf32> to vector<16xf32>
    %277 = vector.shape_cast %276 : vector<16xf32> to vector<16x1xf32>
    %cst_99 = arith.constant 3.200000e+01 : f32
    %278 = vector.broadcast %cst_99 : f32 to vector<16x1xf32>
    %279 = arith.divf %277, %278 : vector<16x1xf32>
    %280 = vector.broadcast %279 : vector<16x1xf32> to vector<16x32xf32>
    %281 = arith.subf %273, %280 : vector<16x32xf32>
    %282 = arith.mulf %281, %281 : vector<16x32xf32>
    %cst_100 = arith.constant dense<0.000000e+00> : vector<16xf32>
    %283 = vector.multi_reduction <add>, %282, %cst_100 [1] : vector<16x32xf32> to vector<16xf32>
    %284 = vector.shape_cast %283 : vector<16xf32> to vector<16x1xf32>
    %cst_101 = arith.constant 3.200000e+01 : f32
    %285 = vector.broadcast %cst_101 : f32 to vector<16x1xf32>
    %286 = arith.divf %284, %285 : vector<16x1xf32>
    %cst_102 = arith.constant 9.99999974E-6 : f32
    %287 = vector.broadcast %cst_102 : f32 to vector<16x1xf32>
    %288 = arith.addf %286, %287 : vector<16x1xf32>
    %289 = math.rsqrt %288 : vector<16x1xf32>
    %290 = vector.broadcast %289 : vector<16x1xf32> to vector<16x32xf32>
    %291 = arith.mulf %281, %290 : vector<16x32xf32>
    %292 = vector.broadcast %274 : vector<1x32xf32> to vector<16x32xf32>
    %293 = arith.mulf %291, %292 : vector<16x32xf32>
    %294 = vector.broadcast %275 : vector<1x32xf32> to vector<16x32xf32>
    %295 = arith.addf %293, %294 : vector<16x32xf32>
    %296 = tpu.iota {dimensions = array<i32: 0>} : vector<2x16xi32>
    %297 = tpu.iota {dimensions = array<i32: 1>} : vector<2x16xi32>
    %c0_103 = arith.constant 0 : index
    %298 = memref.load %arg1[%c0_103] : memref<2xi32, #tpu.memory_space<smem>>
    %c1_i32_104 = arith.constant 1 : i32
    %299 = arith.subi %298, %c1_i32_104 : i32
    %c0_i32_105 = arith.constant 0 : i32
    %300 = arith.maxsi %299, %c0_i32_105 : i32
    %c0_i32_106 = arith.constant 0 : i32
    %301 = vector.broadcast %c0_i32_106 : i32 to vector<2x16xi32>
    %302 = arith.cmpi eq, %296, %301 : vector<2x16xi32>
    %303 = vector.broadcast %300 : i32 to vector<2x16xi32>
    %304 = arith.cmpi eq, %297, %303 : vector<2x16xi32>
    %305 = arith.andi %302, %304 : vector<2x16xi1>
    %c1_107 = arith.constant 1 : index
    %306 = memref.load %arg1[%c1_107] : memref<2xi32, #tpu.memory_space<smem>>
    %c1_i32_108 = arith.constant 1 : i32
    %307 = arith.subi %306, %c1_i32_108 : i32
    %c0_i32_109 = arith.constant 0 : i32
    %308 = arith.maxsi %307, %c0_i32_109 : i32
    %c8_i32 = arith.constant 8 : i32
    %309 = arith.addi %c8_i32, %308 : i32
    %c1_i32_110 = arith.constant 1 : i32
    %310 = vector.broadcast %c1_i32_110 : i32 to vector<2x16xi32>
    %311 = arith.cmpi eq, %296, %310 : vector<2x16xi32>
    %312 = vector.broadcast %309 : i32 to vector<2x16xi32>
    %313 = arith.cmpi eq, %297, %312 : vector<2x16xi32>
    %314 = arith.andi %311, %313 : vector<2x16xi1>
    %315 = arith.ori %305, %314 : vector<2x16xi1>
    %cst_111 = arith.constant 1.000000e+00 : f32
    %cst_112 = arith.constant 0.000000e+00 : f32
    %316 = vector.broadcast %cst_111 : f32 to vector<2x16xf32>
    %317 = vector.broadcast %cst_112 : f32 to vector<2x16xf32>
    %318 = arith.select %315, %316, %317 : vector<2x16xi1>, vector<2x16xf32>
    %cst_113 = arith.constant dense<0.000000e+00> : vector<2x32xf32>
    %319 = tpu.matmul %318, %295, %cst_113 {dimension_numbers = #tpu.dot_dimension_numbers<[1], [0], [0], [1], [0, 0, 1, 1], [], []>} : vector<2x16xf32>, vector<16x32xf32>, vector<2x32xf32> -> vector<2x32xf32>
    %c0_114 = arith.constant 0 : index
    %c768 = arith.constant 768 : index
    %320 = vector.load %arg3[%c0_114, %c768] : memref<32x896xf32, #tpu.memory_space<vmem>>, vector<32x5xf32>
    %cst_115 = arith.constant dense<0.000000e+00> : vector<2x5xf32>
    %321 = tpu.matmul %319, %320, %cst_115 {dimension_numbers = #tpu.dot_dimension_numbers<[1], [0], [0], [1], [0, 0, 1, 1], [], []>} : vector<2x32xf32>, vector<32x5xf32>, vector<2x5xf32> -> vector<2x5xf32>
    %c18 = arith.constant 18 : index
    %c0_116 = arith.constant 0 : index
    %322 = vector.load %arg5[%c18, %c0_116] : memref<24x128xf32, #tpu.memory_space<vmem>>, vector<1x5xf32>
    %323 = vector.broadcast %322 : vector<1x5xf32> to vector<2x5xf32>
    %324 = arith.addf %321, %323 : vector<2x5xf32>
    %c0_117 = arith.constant 0 : index
    %c0_118 = arith.constant 0 : index
    %325 = vector.load %arg6[%c0_117, %c0_118] : memref<2x5xf32, #tpu.memory_space<vmem>>, vector<2x5xf32>
    tpu.vector_store %arg6[%c0_117, %c0_118], %324 {strides = array<i32>} : memref<2x5xf32, #tpu.memory_space<vmem>>, vector<2x5xf32>,
    return
  }
  func.func @transform_0(%arg0: i32, %arg1: memref<2xi32, #tpu.memory_space<smem>>) -> (i32, i32) {
    %c0_i32 = arith.constant 0 : i32
    %c0_i32_0 = arith.constant 0 : i32
    %c0_i32_1 = arith.constant 0 : i32
    return %c0_i32, %c0_i32_0 : i32, i32
  }
  func.func @transform_1(%arg0: i32, %arg1: memref<2xi32, #tpu.memory_space<smem>>) -> (i32, i32) {
    %c0_i32 = arith.constant 0 : i32
    %c0_i32_0 = arith.constant 0 : i32
    %c0_i32_1 = arith.constant 0 : i32
    return %c0_i32, %c0_i32_0 : i32, i32
  }
  func.func @transform_2(%arg0: i32, %arg1: memref<2xi32, #tpu.memory_space<smem>>) -> (i32, i32) {
    %c0_i32 = arith.constant 0 : i32
    %c0_i32_0 = arith.constant 0 : i32
    %c0_i32_1 = arith.constant 0 : i32
    return %c0_i32, %c0_i32_0 : i32, i32
  }
  func.func @transform_3(%arg0: i32, %arg1: memref<2xi32, #tpu.memory_space<smem>>) -> (i32, i32) {
    %c0_i32 = arith.constant 0 : i32
    %c0_i32_0 = arith.constant 0 : i32
    %c0_i32_1 = arith.constant 0 : i32
    return %c0_i32, %c0_i32_0 : i32, i32
  }
  func.func @transform_4(%arg0: i32, %arg1: memref<2xi32, #tpu.memory_space<smem>>) -> (i32, i32) {
    %c0_i32 = arith.constant 0 : i32
    %c0_i32_0 = arith.constant 0 : i32
    %c0_i32_1 = arith.constant 0 : i32
    return %c0_i32, %c0_i32_0 : i32, i32
  }
}

</mosaic_0001>

<bundles_post_ra>
// kernel: gpt2_sentiment_classifier_forward.1
= control target key start
LH: loop header
LB: loop body
LE: loop exit
PB: predicated region body
PF: predicated region fallthrough
CT: control target
= control target key end

     0   :  { %s3154_s0 = inlined_call_operand.vmem [shape: s32[2], index: 0, kind: input, shape index: {}]   ;;  %s3155_s1 = inlined_call_operand.vmem [shape: s32[16,1], index: 1, kind: input, shape index: {}]   ;;  %s3156_s2 = inlined_call_operand.hbm [shape: f32[32,896], index: 2, kind: input, shape index: {}]   ;;  %s3157_s3 = inlined_call_operand.hbm [shape: f32[128,384], index: 3, kind: input, shape index: {}]   ;;  %s3158_s4 = inlined_call_operand.hbm [shape: f32[24,128], index: 4, kind: input, shape index: {}]   ;;  %s3159_s5 = inlined_call_operand.hbm [shape: f32[2,5], index: 5, kind: output, shape index: {}]  }
   0x1   :  { %s10_s20 = sshll.u32 %s3154_s0, 4  ;;  %s11_s20 = int_to_ptr.vmem [resolvable:$true] %s10_s20 }
   0x2   :  { %s2718_s21 = scalar_lea.vmem %s11_s20, 16  ;;  %p2723_p1 = scmp.lt.s32.totalorder %s11_s20, %s11_s20 }
   0x3   :  { %p2719_p0 = scmp.ne.s32.totalorder %s11_s20, %s2718_s21  ;;  %p2724_p2 = scmp.lt.s32.totalorder %s2718_s21, %s2718_s21 }
   0x5   :  { %p2725_p3 = por %p2724_p2, %p2723_p1 }
   0x7   :  { %p2726_p4 = pnand %p2725_p3, %p2719_p0 }
   0x9   :  { %2729 = shalt.err (!%p2726_p4)  }
   0xa   :  { %s2818_s22 = smov [#allocation3]  }
   0xb   :  { %13 = dma.vmem_to_smem %s11_s20, 16, %s2818_s22, [#allocation2] }
   0xc   :  { %2810 = dma.done.wait [#allocation2], 16 }
   0xd   :  { %2811 = vsyncadd [#allocation2], 4294967280 }
   0xe   :  { %15 = sfence }
   0xf   :  { %16 = vsyncpa [#allocation5], 0 }
  0x10   :  { %17 = vsyncpa [#allocation8], 0 }
  0x11   :  { %18 = vsyncpa [#allocation6], 0  ;;  %s2819_s23 = smov [#allocation7]  }
  0x12   :  { %s38_s24 = sshll.u32 %s2819_s23, 4  ;;  %s39_s24 = int_to_ptr.vmem [resolvable:$true] %s38_s24 }
  0x13   :  { %s2738_s0 = scalar_lea.vmem %s39_s24, 6144  ;;  %p2743_p6 = scmp.lt.s32.totalorder %s39_s24, %s39_s24 }
  0x14   :  { %p2739_p5 = scmp.ne.s32.totalorder %s39_s24, %s2738_s0  ;;  %p2744_p7 = scmp.lt.s32.totalorder %s2738_s0, %s2738_s0 }
  0x16   :  { %p2745_p8 = por %p2744_p7, %p2743_p6 }
  0x18   :  { %p2746_p9 = pnand %p2745_p8, %p2739_p5 }
  0x1a   :  { %2749 = shalt.err (!%p2746_p9)
}
  0x1b   :  { %s2820_s25 = smov 384   ;;  %s2821_s26 = smov 24  }
  0x1c   :  { %44 = dma.hbm_to_vmem [thread:$0]  %s3157_s3, 6144, %s39_s24, [#allocation8], %s2820_s25, %s2820_s25, %s2821_s26  }
  0x1d   :  { %s2822_s29 = smov [#allocation4]  }
  0x1e   :  { %s26_s30 = sshll.u32 %s2822_s29, 4  ;;  %s27_s30 = int_to_ptr.vmem [resolvable:$true] %s26_s30 }
  0x1f   :  { %s2758_s6 = scalar_lea.vmem %s27_s30, 3584  ;;  %p2763_p11 = scmp.lt.s32.totalorder %s27_s30, %s27_s30 }
  0x20   :  { %p2759_p10 = scmp.ne.s32.totalorder %s27_s30, %s2758_s6  ;;  %p2764_p12 = scmp.lt.s32.totalorder %s2758_s6, %s2758_s6 }
  0x22   :  { %p2765_p13 = por %p2764_p12, %p2763_p11 }
  0x24   :  { %p2766_p0 = pnand %p2765_p13, %p2759_p10 }
  0x26   :  { %2769 = shalt.err (!%p2766_p0)
}
  0x27   :  { %s2823_s7 = smov 896   ;;  %s2824_s8 = smov 56  }
  0x28   :  { %32 = dma.hbm_to_vmem [thread:$0]  %s3156_s2, 3584, %s27_s30, [#allocation5], %s2823_s7, %s2823_s7, %s2824_s8  }
  0x29   :  { %s2825_s11 = smov [#allocation9]  }
  0x2a   :  { %s50_s12 = sshll.u32 %s2825_s11, 4  ;;  %s51_s12 = int_to_ptr.vmem [resolvable:$true] %s50_s12 }
  0x2b   :  { %s2778_s3 = scalar_lea.vmem %s51_s12, 384  ;;  %p2783_p2 = scmp.lt.s32.totalorder %s51_s12, %s51_s12 }
  0x2c   :  { %p2779_p1 = scmp.ne.s32.totalorder %s51_s12, %s2778_s3  ;;  %p2784_p3 = scmp.lt.s32.totalorder %s2778_s3, %s2778_s3 }
  0x2e   :  { %p2785_p4 = por %p2784_p3, %p2783_p2 }
  0x30   :  { %p2786_p5 = pnand %p2785_p4, %p2779_p1 }
  0x32   :  { %2789 = shalt.err (!%p2786_p5)
}
  0x33   :  { %s2826_s13 = smov 128   ;;  %s2827_s14 = smov 8  }
  0x34   :  { %56 = dma.hbm_to_vmem [thread:$0]  %s3158_s4, 384, %s51_s12, [#allocation8], %s2826_s13, %s2826_s13, %s2827_s14  }
  0x35   :  { %2812 = dma.done.wait [#allocation5], 3584  }
  0x36   :  { %2813 = vsyncadd [#allocation5], 4294963712 }
  0x37   :  { %2814 = dma.done.wait [#allocation8], 6528  }
  0x38   :  { %2815 = vsyncadd [#allocation8], 4294960768  ;;  %v2828_v0 = vmov 0   ;;  %v66_v1 = vld [vmem:[%s3155_s1] sm:$0xff]  ;;  %v100_v2 = vld [vmem:[#allocation7 + $0xe8] sm:$0xff]  ;;  %v68_v13 = vlaneseq  ;;  %vm101_vm2 = vcmask 654336  }
  0x39   :  { %2657 = vset.pattern.permute.xlu0 %v2828_v0  ;;  %2403 = vmatprep.subr.mxu0 %v100_v2  ;;  %v99_v3 = vld [vmem:[#allocation7 + $0xd0] sm:$0xff]  ;;  %v67_v4 = vld [vmem:[%s3155_s1 + $0x8] sm:$0xff]  ;;  %v98_v5 = vld [vmem:[#allocation7 + $0xb8] sm:$0xff]  ;;  %v2829_v22 = vmov 0.0   ;;  %vm3160_vm7 = vcmask 261120   ;;  %vm346_vm8 = vcmask 130048  }
  0x3a   :  { %76 = vperm.xlu0 %2657, %v66_v1   ;;  %2404 = vmatpush3.msra.mxu0 %v100_v2  ;;  %v97_v6 = vld [vmem:[#allocation7 + $0xa0] sm:$0xff]  ;;  %v96_v7 = vld [vmem:[#allocation7 + $0x88] sm:$0xff]  ;;  %v95_v8 = vld [vmem:[#allocation7 + $0x70] sm:$0xff]  ;;  %v2887_v14 = vshrl.u32 %v68_v13, 7  ;;  %v2893_v17 = vand.u32 127, %v68_v13  ;;  %s2830_s1 = smov 96  }
  0x3b   :  { %2405 = vmatprep.subr.mxu0 %v99_v3  ;;  %v94_v9 = vld [vmem:[#allocation7 + $0x58] sm:$0xff]  ;;  %v93_v10 = vld [vmem:[#allocation7 + $0x40] sm:$0xff]  ;;  %v92_v11 = vld [vmem:[#allocation7 + $0x28] sm:$0xff]  ;;  %s2831_s4 = smov 112   ;;  %s2832_s20 = smov 80  }
  0x3c   :  { %2406 = vmatpush3.msra.mxu0 %v99_v3  ;;  %v91_v12 = vld [vmem:[#allocation7 + $0x10] sm:$0xff]  ;;  %v73_v15 = vand.u32 7, %v2887_v14  ;;  %v2891_v16 = vadd.s32 8, %v2887_v14  ;;  %v253_v40 = vld [vmem:[#allocation4 + $0xb8] sm:$0xff]  ;;  %v252_v41 = vld [vmem:[#allocation4 + $0x80] sm:$0xff]  ;;  %s2967_s21 = sld [smem:[#allocation3]] }
  0x3d   :  { %2407 = vmatprep.subr.mxu0 %v98_v5  ;;  %v251_v42 = vld [vmem:[#allocation4 + $0x48] sm:$0xff]  ;;  %v250_v43 = vld [vmem:[#allocation4 + $0x10] sm:$0xff]  ;;  %v2220_v51 = vld [vmem:[#allocation9] ss:$0 sm:$0xff]  ;;  %s2969_s22 = sld [smem:[#allocation3 + $0x1]]  ;;  %s2834_s23 = smov 64  }
  0x3e   :  { %79 = vperm.xlu0 %2657, %v67_v4   ;;  %2408 = vmatpush3.msra.mxu0 %v98_v5  ;;  %v83_v18 = vadd.s32 64, %v73_v15  ;;  %v74_v19 = vand.u32 7, %v2891_v16  ;;  %v2221_v53 = vld [vmem:[#allocation9 + $0x1] ss:$0 sm:$0xff]  ;;  %v2222_v60 = vld [vmem:[#allocation9 + $0x2] ss:$0 sm:$0xff] }
  0x3f   :  { %2409 = vmatprep.subr.mxu0 %v97_v6  ;;  %s2835_s24 = smov 48   ;;  %s2836_s0 = smov 16  }
  0x40   :  { %2410 = vmatpush3.msra.mxu0 %v97_v6  ;;  %vm85_vm0 = vcmp.eq.s32.totalorder %v2893_v17, %v83_v18  ;;  %v84_v20 = vadd.s32 64, %v74_v19  ;;  %s2838_s28 = smov [#allocation10]  }
  0x41   :  { %2411 = vmatprep.subr.mxu0 %v96_v7  ;;  %s2207_s29 = sshll.u32 %s2838_s28, 4  ;;  %s2208_s29 = int_to_ptr.vmem [resolvable:$true] %s2207_s29 }
  0x42   :  { %2412 = vmatpush3.msra.mxu0 %v96_v7  ;;  %vm86_vm4 = vcmp.eq.s32.totalorder %v2893_v17, %v84_v20  ;;  %v186_v7 = vand.u32 7, %v2893_v17  ;;  %s2274_s26 = sadd.s32 4294967295, %s2967_s21  ;;  %s2790_s30 = scalar_lea.vmem %s2208_s29, 32 }
  0x43   :  { %2413 = vmatprep.subr.mxu0 %v95_v8  ;;  %v200_v13 = vstv %s2969_s22  ;;  %s2275_s25 = sadd.s32 4294967295, %s2969_s22  ;;  %p2028_p7 = scmp.gt.s32.totalorder %s2274_s26, 0 }
  0x44   :  { %2414 = vmatpush3.msra.mxu0 %v95_v8  ;;  %v184_v8 = vshra.s32 %v2891_v16, 3  ;;  %vm2955_vm9 = vcmp.le.s32.totalorder %v186_v7, %v74_v19  ;;  %vm201_vm15 = vcmp.lt.s32.totalorder %v186_v7, %v200_v13  ;;  %v183_v16 = vshra.s32 %v2887_v14, 3  ;;  %v758_v13 = vld [vmem:[#allocation4 + $0x58] sm:$0xff]  ;;  %p2035_p6 = scmp.gt.s32.totalorder %s2275_s25, 0  ;;  %p2791_p8 = scmp.ne.s32.totalorder %s2208_s29, %s2790_s30 }
  0x45   :  { %2415 = vmatprep.subr.mxu0 %v94_v9  ;;  %v2833_v19 = vmov -1e+30   ;;  %s3194_s26 = smov (!%p2028_p7, %s2274_s26), 0  ;;  %p2795_p9 = scmp.lt.s32.totalorder %s2208_s29, %s2208_s29 }
  0x46   :  { %2416 = vmatpush3.msra.mxu0 %v94_v9  ;;  %v185_v9 = vshra.s32 %v2893_v17, 3  ;;  %s3192_s25 = smov (!%p2035_p6, %s2275_s25), 0  ;;  %p2796_p10 = scmp.lt.s32.totalorder %s2790_s30, %s2790_s30 }
  0x47   :  { %2417 = vmatprep.subr.mxu0 %v93_v10  ;;  %s2037_s27 = sadd.s32 8, %s3192_s25 }
  0x48   :  { %2418 = vmatpush3.msra.mxu0 %v93_v10  ;;  %vm2959_vm10 = vcmp.eq.s32.totalorder %v184_v8, %v185_v9  ;;  %vm193_vm12 = vcmp.eq.s32.totalorder %v185_v9, 0  ;;  %vm198_vm14 = vcmp.eq.s32.totalorder %v185_v9, 1  ;;  %p2797_p11 = por %p2796_p10, %p2795_p9 }
  0x49   :  { %2419 = vmatprep.subr.mxu0 %v92_v11  ;;  %vm192_vm11 = vmand %vm2959_vm10, %vm2955_vm9 }
  0x4a   :  { %2420 = vmatpush3.msra.mxu0 %v92_v11  ;;  %v760_v11 = vld [vmem:[#allocation4 + $0xc8] sm:$0xff]  ;;  %p2798_p12 = pnand %p2797_p11, %p2791_p8 }
  0x4b   :  { %2421 = vmatprep.subr.mxu0 %v91_v12 }
  0x4c   :  { %2422 = vmatpush3.msra.mxu0 %v91_v12  ;;  %v195_v12 = vstv %s2967_s21 }
  0x4d   :  { %2426 = vmatprep.subr.mxu0 %v253_v40  ;;  %vm196_vm13 = vcmp.lt.s32.totalorder %v186_v7, %v195_v12  ;;  %v759_v12 = vld [vmem:[#allocation4 + $0x90] sm:$0xff] }
  0xb5   :  { %v77_v21 = vpop.permute.xlu0 %76 }
  0xb6   :  { %vm81_vm1 = vcmp.eq.s32.totalorder %v2893_v17, %v77_v21 }
  0xb7   :  { %vm87_vm3 = vmor %vm81_vm1, %vm85_vm0 }
  0xb8   :  { %v89_v23 = vsel %vm87_vm3, 1.0, %v2829_v22  ;;  %vm197_vm0 = vmand %vm193_vm12, %vm196_vm13  ;;  %vm187_vm3 = vcmp.eq.s32.totalorder %v183_v16, %v185_v9  ;;  %v757_v16 = vld [vmem:[#allocation4 + $0x20] sm:$0xff] }
  0xb9   :  { %2423 = vmatprep.mubr.msk.f32.mxu0 %vm101_vm2, %v89_v23  ;;  %v80_v24 = vpop.permute.xlu0 %79  ;;  %vm202_vm1 = vmand %vm198_vm14, %vm201_vm15 }
  0xba   :  { %vm82_vm5 = vcmp.eq.s32.totalorder %v2893_v17, %v80_v24 }
  0xbb   :  { %vm88_vm6 = vmor %vm82_vm5, %vm86_vm4 }
  0xbc   :  { %v90_v25 = vsel %vm88_vm6, 1.0, %v2829_v22  ;;  %vm203_vm4 = vmor %vm197_vm0, %vm202_vm1 }
  0xbd   :  { %2424 = vmatmul.mubr.msk.f32.vlgmr.msra.gmra.mxu0 %vm101_vm2, %v90_v25  ;;  %vm189_vm2 = vcmp.le.s32.totalorder %v186_v7, %v73_v15  ;;  %vm205_vm6 = vmand %vm192_vm11, %vm203_vm4 }
  0xbe   :  { %2427 = vmatpush3.msra.mxu0 %v253_v40  ;;  %vm191_vm5 = vmand %vm187_vm3, %vm189_vm2  ;;  %v2981_v20 = vsel %vm205_vm6, 0.0, %v2833_v19 }
  0xbf   :  { %2428 = vmatprep.subr.mxu0 %v252_v41 }
  0xc0   :  { %2429 = vmatpush3.msra.mxu0 %v252_v41 }
  0xc1   :  { %2430 = vmatprep.subr.mxu0 %v251_v42 }
  0xc2   :  { %2431 = vmatpush3.msra.mxu0 %v251_v42 }
  0xc3   :  { %2432 = vmatprep.subr.mxu0 %v250_v43 }
  0xc4   :  { %2433 = vmatpush3.msra.mxu0 %v250_v43 }
 0x17d   :  { %v2906_v26 = vpop.f32.mrf.mxu0 }
 0x17e   :  { %v214_v29 = vsel %vm3160_vm7, %v2906_v26, 0.0 }
 0x17f   :  { %v2908_v27 = vpop.f32.mrf.mxu0 }
 0x180   :  { %v211_v28 = vsel %vm3160_vm7, %v2908_v27, 0.0 }
 0x181   :  { %212 = vadd.xlane.f32.xlu1 %v211_v28 }
 0x185   :  { %215 = vadd.xlane.f32.xlu1 %v214_v29 }
 0x20a   :  { %v213_v30 = vpop.xlane.xlu1 %212 }
 0x20b   :  { %v218_v31 = vmul.f32 0.03125, %v213_v30 }
 0x20d   :  { %v220_v32 = vsub.f32 %v2908_v27, %v218_v31 }
 0x20e   :  { %v216_v33 = vpop.xlane.xlu1 %215 }
 0x20f   :  { %v219_v34 = vmul.f32 0.03125, %v216_v33  ;;  %v222_v35 = vmul.f32 %v220_v32, %v220_v32 }
 0x211   :  { %v221_v36 = vsub.f32 %v2906_v26, %v219_v34  ;;  %v224_v37 = vsel %vm3160_vm7, %v222_v35, 0.0 }
 0x212   :  { %225 = vadd.xlane.f32.xlu0 %v224_v37 }
 0x213   :  { %v223_v38 = vmul.f32 %v221_v36, %v221_v36 }
 0x215   :  { %v227_v39 = vsel %vm3160_vm7, %v223_v38, 0.0 }
 0x216   :  { %228 = vadd.xlane.f32.xlu1 %v227_v39 }
 0x29b   :  { %v226_v44 = vpop.xlane.xlu0 %225 }
 0x29c   :  { %v230_v45 = vmul.f32 0.03125, %v226_v44 }
 0x29e   :  { %v232_v46 = vadd.f32 1e-05, %v230_v45 }
 0x29f   :  { %v229_v47 = vpop.xlane.xlu1 %228 }
 0x2a0   :  { %2658 = vrsqrt.f32 %v232_v46  ;;  %v231_v48 = vmul.f32 0.03125, %v229_v47 }
 0x2a2   :  { %v233_v49 = vadd.f32 1e-05, %v231_v48 }
 0x2a4   :  { %2660 = vrsqrt.f32 %v233_v49 }
 0x2ad   :  { %v2659_v50 = vpop.eup %2658 }
 0x2ae   :  { %v236_v52 = vmul.f32 %v2659_v50, %v220_v32 }
 0x2b0   :  { %v242_v54 = vmul.f32 %v2220_v51, %v236_v52 }
 0x2b1   :  { %v2661_v55 = vpop.eup %2660 }
 0x2b2   :  { %v237_v56 = vmul.f32 %v2661_v55, %v221_v36  ;;  %v248_v57 = vadd.f32 %v2221_v53, %v242_v54 }
 0x2b4   :  { %v243_v58 = vmul.f32 %v2220_v51, %v237_v56  ;;  %2434 = vmatprep.mubr.msk.f32.mxu0 %vm3160_vm7, %v248_v57 }
 0x2b6   :  { %v249_v59 = vadd.f32 %v2221_v53, %v243_v58 }
 0x2b8   :  { %2435 = vmatmul.mubr.msk.f32.vlgmr.msra.gmra.mxu0 %vm3160_vm7, %v249_v59  ;;  %vm204_vm7 = vmand %vm191_vm5, %vm203_vm4 }
 0x2b9   :  { %v2983_v24 = vsel %vm204_vm7, 0.0, %v2833_v19  ;;  %vm3165_vm7 = vcmask 261120  }
 0x2ba   :  { %vm3166_vm9 = vmmov %vm3165_vm7 }
 0x2bb   :  { %vm3167_vm10 = vmmov %vm3165_vm7 }
 0x2bc   :  { %vm3168_vm11 = vmmov %vm3165_vm7 }
 0x2bd   :  { %vm3169_vm12 = vmmov %vm3165_vm7 }
 0x2be   :  { %vm3170_vm13 = vmmov %vm3165_vm7 }
 0x2bf   :  { %vm3171_vm14 = vmmov %vm3165_vm7 }
 0x2c0   :  { %vm3172_vm15 = vmmov %vm3165_vm7 }
 0x2c1   :  { %vm3173_vm0 = vmmov %vm3165_vm7 }
 0x2c2   :  { %vm3174_vm1 = vmmov %vm3173_vm0 }
 0x2c3   :  { %vm3175_vm2 = vmmov %vm3173_vm0 }
 0x2c4   :  { %vm3176_vm3 = vmmov %vm3173_vm0 }
 0x2c5   :  { %vm3177_vm4 = vmmov %vm3173_vm0 }
 0x2c6   :  { %vm3178_vm5 = vmmov %vm3173_vm0 }
 0x2c7   :  { %vm3179_vm6 = vmmov %vm3173_vm0 }
 0x378   :  { %v2436_v61 = vpop.f32.mrf.mxu0 }
 0x379   :  { %v2920_v62 = vadd.f32 %v2436_v61, %v2222_v60 }
 0x37a   :  { %v331_v63 = vpop.f32.mrf.mxu0 }
 0x37b   :  { %v2922_v0 = vadd.f32 %v2222_v60, %v331_v63  ;;  %344 = vrot.lane.b32.xlu1 %v2920_v62, %s2830_s1 }
 0x37d   :  { %543 = vrot.lane.b32.xlu0 %v2922_v0, %s2831_s4  ;;  %2441 = vmatprep.mubr.msk.f32.mxu1 %vm346_vm8, %v2922_v0 }
 0x37f   :  { %549 = vrot.lane.b32.xlu1 %v2920_v62, %s2832_s20 }
 0x383   :  { %342 = vrot.lane.b32.xlu1 %v2922_v0, %s2830_s1 }
 0x387   :  { %547 = vrot.lane.b32.xlu1 %v2922_v0, %s2832_s20 }
 0x38b   :  { %545 = vrot.lane.b32.xlu1 %v2920_v62, %s2831_s4 }
 0x3ed   :  { %v345_v1 = vpop.permute.xlu1 %344 }
 0x3ee   :  { %2437 = vmatprep.subr.msk.mxu1 %vm346_vm8, %v345_v1 }
 0x3ef   :  { %2438 = vmatpush3.xpose.msk.msra.mxu1 %vm346_vm8, %v345_v1  ;;  %v544_v2 = vpop.permute.xlu0 %543 }
 0x3f0   :  { %2455 = vmatprep.mubr.msk.f32.mxu0 %vm346_vm8, %v544_v2 }
 0x3f1   :  { %v550_v3 = vpop.permute.xlu1 %549 }
 0x3f2   :  { %2451 = vmatprep.subr.msk.mxu0 %vm346_vm8, %v550_v3 }
 0x3f3   :  { %2452 = vmatpush3.xpose.msk.msra.mxu0 %vm346_vm8, %v550_v3 }
 0x3f5   :  { %v343_v4 = vpop.permute.xlu1 %342 }
 0x3f6   :  { %2439 = vmatprep.subr.msk.mxu1 %vm346_vm8, %v343_v4 }
 0x3f7   :  { %2440 = vmatpush3.xpose.msk.msra.mxu1 %vm346_vm8, %v343_v4 }
 0x3f9   :  { %v548_v5 = vpop.permute.xlu1 %547 }
 0x3fa   :  { %2442 = vmatmul.mubr.msk.f32.vlgmr.msra.gmra.mxu1 %vm346_vm8, %v2920_v62  ;;  %2453 = vmatprep.subr.msk.mxu0 %vm346_vm8, %v548_v5 }
 0x3fb   :  { %2454 = vmatpush3.xpose.msk.msra.mxu0 %vm346_vm8, %v548_v5 }
 0x3fd   :  { %v546_v6 = vpop.permute.xlu1 %545 }
 0x3fe   :  { %2456 = vmatmul.mubr.msk.f32.vlgmr.msra.gmra.mxu0 %vm346_vm8, %v546_v6 }
 0x4ba   :  { %v2443_v18 = vpop.f32.mrf.mxu1 }
 0x4bb   :  { %v431_v21 = vmul.f32 0.25, %v2443_v18 }
 0x4bc   :  { %v421_v23 = vpop.f32.mrf.mxu1 }
 0x4bd   :  { %v430_v25 = vmul.f32 0.25, %v421_v23  ;;  %v433_v15 = vadd.f32 %v431_v21, %v2981_v20 }
 0x4be   :  { %v2457_v28 = vpop.f32.mrf.mxu0 }
 0x4bf   :  { %v437_v29 = vsel %vm346_vm8, %v433_v15, -inf  ;;  %v432_v30 = vadd.f32 %v430_v25, %v2983_v24  ;;  %v635_v32 = vmul.f32 0.25, %v2457_v28 }
 0x4c0   :  { %v625_v31 = vpop.f32.mrf.mxu0  ;;  %438 = vmax.xlane.f32.xlu0 %v437_v29 }
 0x4c1   :  { %v634_v33 = vmul.f32 0.25, %v625_v31  ;;  %v434_v34 = vsel %vm346_vm8, %v432_v30, -inf  ;;  %v637_v37 = vadd.f32 %v635_v32, %v2981_v20  ;;  %v2239_v31 = vld [vmem:[#allocation9 + $0x3] ss:$0 sm:$0xff] }
 0x4c2   :  { %435 = vmax.xlane.f32.xlu1 %v434_v34 }
 0x4c3   :  { %v636_v35 = vadd.f32 %v634_v33, %v2983_v24  ;;  %v641_v38 = vsel %vm346_vm8, %v637_v37, -inf }
 0x4c5   :  { %v638_v36 = vsel %vm346_vm8, %v636_v35, -inf }
 0x4c6   :  { %639 = vmax.xlane.f32.xlu1 %v638_v36 }
 0x4ca   :  { %642 = vmax.xlane.f32.xlu1 %v641_v38 }
 0x4db   :  { %458 = vrot.lane.b32.xlu1 %v2920_v62, %s2834_s23 }
 0x4df   :  { %662 = vrot.lane.b32.xlu1 %v2920_v62, %s2835_s24 }
 0x549   :  { %v439_v39 = vpop.xlane.xlu0 %438 }
 0x54a   :  { %v441_v40 = vsub.f32 %v433_v15, %v439_v39 }
 0x54b   :  { %v436_v41 = vpop.xlane.xlu1 %435 }
 0x54c   :  { %v444_v42 = vmul.f32 1.442695, %v441_v40  ;;  %v440_v43 = vsub.f32 %v432_v30, %v436_v41 }
 0x54e   :  { %2662 = vpow2.f32 %v444_v42  ;;  %v442_v44 = vmul.f32 1.442695, %v440_v43 }
 0x54f   :  { %v640_v45 = vpop.xlane.xlu1 %639 }
 0x550   :  { %2664 = vpow2.f32 %v442_v44  ;;  %v644_v46 = vsub.f32 %v636_v35, %v640_v45 }
 0x552   :  { %v646_v47 = vmul.f32 1.442695, %v644_v46 }
 0x553   :  { %v643_v48 = vpop.xlane.xlu1 %642 }
 0x554   :  { %2666 = vpow2.f32 %v646_v47  ;;  %v645_v49 = vsub.f32 %v637_v37, %v643_v48  ;;  %v894_v47 = vld [vmem:[#allocation4 + $0xa8] sm:$0xff]  ;;  %v893_v48 = vld [vmem:[#allocation4 + $0x70] sm:$0xff] }
 0x555   :  { %2476 = vmatprep.subr.mxu0 %v894_v47 }
 0x556   :  { %v648_v50 = vmul.f32 1.442695, %v645_v49  ;;  %2477 = vmatpush3.msra.mxu0 %v894_v47  ;;  %v892_v49 = vld [vmem:[#allocation4 + $0x38] sm:$0xff] }
 0x557   :  { %v459_v51 = vpop.permute.xlu1 %458  ;;  %2478 = vmatprep.subr.mxu0 %v893_v48 }
 0x558   :  { %2668 = vpow2.f32 %v648_v50  ;;  %2444 = vmatprep.subr.mxu1 %v459_v51  ;;  %2479 = vmatpush3.msra.mxu0 %v893_v48  ;;  %v891_v50 = vld [vmem:[#allocation4] sm:$0xff] }
 0x559   :  { %2445 = vmatpush3.msra.mxu1 %v459_v51  ;;  %2480 = vmatprep.subr.mxu0 %v892_v49 }
 0x55a   :  { %2481 = vmatpush3.msra.mxu0 %v892_v49 }
 0x55b   :  { %v2663_v52 = vpop.eup %2662  ;;  %v663_v60 = vpop.permute.xlu1 %662  ;;  %2482 = vmatprep.subr.mxu0 %v891_v50 }
 0x55c   :  { %v449_v53 = vsel %vm346_vm8, %v2663_v52, 0.0  ;;  %2483 = vmatpush3.msra.mxu0 %v891_v50  ;;  %v2245_v50 = vld [vmem:[#allocation9 + $0x7] ss:$0 sm:$0xff] }
 0x55d   :  { %v2665_v54 = vpop.eup %2664  ;;  %450 = vadd.xlane.f32.xlu0 %v449_v53 }
 0x55e   :  { %v446_v55 = vsel %vm346_vm8, %v2665_v54, 0.0 }
 0x55f   :  { %447 = vadd.xlane.f32.xlu1 %v446_v55 }
 0x561   :  { %v2667_v56 = vpop.eup %2666 }
 0x562   :  { %v650_v57 = vsel %vm346_vm8, %v2667_v56, 0.0 }
 0x563   :  { %651 = vadd.xlane.f32.xlu1 %v650_v57 }
 0x565   :  { %v2669_v58 = vpop.eup %2668 }
 0x566   :  { %v653_v59 = vsel %vm346_vm8, %v2669_v58, 0.0 }
 0x567   :  { %654 = vadd.xlane.f32.xlu0 %v653_v59 }
 0x574   :  { %660 = vrot.lane.b32.xlu1 %v2922_v0, %s2835_s24 }
 0x57d   :  { %456 = vrot.lane.b32.xlu0 %v2922_v0, %s2834_s23 }
 0x5e6   :  { %v451_v61 = vpop.xlane.xlu0 %450 }
 0x5e7   :  { %2670 = vrcp.f32 %v451_v61 }
 0x5e8   :  { %v448_v62 = vpop.xlane.xlu1 %447 }
 0x5e9   :  { %2672 = vrcp.f32 %v448_v62 }
 0x5ec   :  { %v652_v63 = vpop.xlane.xlu1 %651 }
 0x5ed   :  { %2674 = vrcp.f32 %v652_v63 }
 0x5f0   :  { %v655_v1 = vpop.xlane.xlu0 %654  ;;  %v661_v7 = vpop.permute.xlu1 %660 }
 0x5f1   :  { %2676 = vrcp.f32 %v655_v1 }
 0x5f4   :  { %v457_v2 = vpop.permute.xlu0 %456  ;;  %v2671_v3 = vpop.eup %2670 }
 0x5f5   :  { %2446 = vmatprep.subr.mxu1 %v457_v2  ;;  %v455_v6 = vmul.f32 %v2671_v3, %v2663_v52 }
 0x5f6   :  { %v2673_v4 = vpop.eup %2672  ;;  %2447 = vmatpush3.msra.mxu1 %v457_v2 }
 0x5f7   :  { %2458 = vmatprep.subr.mxu1 %v663_v60  ;;  %v453_v5 = vmul.f32 %v2673_v4, %v2665_v54  ;;  %v1014_v4 = vld [vmem:[#allocation7 + $0x168] sm:$0xff] }
 0x5f9   :  { %2448 = vmatprep.mubr.msk.f32.mxu1 %vm346_vm8, %v453_v5  ;;  %v1013_v5 = vld [vmem:[#allocation7 + $0x150] sm:$0xff] }
 0x5fa   :  { %v2675_v0 = vpop.eup %2674  ;;  %2449 = vmatmul.mubr.msk.f32.vlgmr.msra.gmra.mxu1 %vm346_vm8, %v455_v6  ;;  %v1012_v6 = vld [vmem:[#allocation7 + $0x138] sm:$0xff] }
 0x5fb   :  { %2459 = vmatpush3.msra.mxu1 %v663_v60  ;;  %v657_v8 = vmul.f32 %v2675_v0, %v2667_v56  ;;  %v2241_v60 = vld [vmem:[#allocation9 + $0x5] ss:$0 sm:$0xff] }
 0x5fc   :  { %2460 = vmatprep.subr.mxu1 %v661_v7  ;;  %v1011_v0 = vld [vmem:[#allocation7 + $0x120] sm:$0xff] }
 0x5fd   :  { %2461 = vmatpush3.msra.mxu1 %v661_v7  ;;  %2462 = vmatprep.mubr.msk.f32.mxu1 %vm346_vm8, %v657_v8  ;;  %v1010_v7 = vld [vmem:[#allocation7 + $0x108] sm:$0xff]  ;;  %v1009_v8 = vld [vmem:[#allocation7 + $0xf0] sm:$0xff] }
 0x5fe   :  { %v2677_v9 = vpop.eup %2676  ;;  %2465 = vmatprep.subr.mxu1 %v760_v11 }
 0x5ff   :  { %v659_v10 = vmul.f32 %v2677_v9, %v2669_v58  ;;  %v2240_v58 = vld [vmem:[#allocation9 + $0x4] ss:$0 sm:$0xff]  ;;  %v1008_v9 = vld [vmem:[#allocation7 + $0xd8] sm:$0xff] }
 0x601   :  { %2463 = vmatmul.mubr.msk.f32.vlgmr.msra.gmra.mxu1 %vm346_vm8, %v659_v10  ;;  %v1007_v10 = vld [vmem:[#allocation7 + $0xc0] sm:$0xff] }
 0x602   :  { %2466 = vmatpush3.msra.mxu1 %v760_v11  ;;  %v1006_v11 = vld [vmem:[#allocation7 + $0xa8] sm:$0xff] }
 0x603   :  { %2467 = vmatprep.subr.mxu1 %v759_v12 }
 0x604   :  { %2468 = vmatpush3.msra.mxu1 %v759_v12  ;;  %v1005_v12 = vld [vmem:[#allocation7 + $0x90] sm:$0xff] }
 0x605   :  { %2469 = vmatprep.subr.mxu1 %v758_v13 }
 0x606   :  { %2470 = vmatpush3.msra.mxu1 %v758_v13  ;;  %v1004_v13 = vld [vmem:[#allocation7 + $0x78] sm:$0xff] }
 0x607   :  { %2471 = vmatprep.subr.mxu1 %v757_v16 }
 0x608   :  { %2472 = vmatpush3.msra.mxu1 %v757_v16  ;;  %v1003_v16 = vld [vmem:[#allocation7 + $0x60] sm:$0xff] }
 0x609   :  { %2487 = vmatprep.subr.mxu1 %v1014_v4 }
 0x6ba   :  { %v2450_v18 = vpop.f32.mrf.mxu1 }
 0x6bc   :  { %v534_v19 = vpop.f32.mrf.mxu1 }
 0x6c1   :  { %v2464_v21 = vpop.f32.mrf.mxu1 }
 0x6c2   :  { %751 = vrot.lane.b32.xlu1 %v2464_v21, %s2836_s0  ;;  %v1000_v21 = vld [vmem:[#allocation7 + $0x18] sm:$0xff] }
 0x6c3   :  { %v738_v23 = vpop.f32.mrf.mxu1 }
 0x6c4   :  { %749 = vrot.lane.b32.xlu0 %v738_v23, %s2836_s0  ;;  %v999_v23 = vld [vmem:[#allocation7] sm:$0xff] }
 0x734   :  { %v752_v25 = vpop.permute.xlu1 %751 }
 0x735   :  { %v756_v29 = vsel %vm346_vm8, %v2450_v18, %v752_v25  ;;  %v1002_v18 = vld [vmem:[#allocation7 + $0x48] sm:$0xff]  ;;  %v2242_v25 = vld [vmem:[#allocation9 + $0x6] ss:$0 sm:$0xff] }
 0x736   :  { %v750_v15 = vpop.permute.xlu0 %749 }
 0x737   :  { %v755_v28 = vsel %vm346_vm8, %v534_v19, %v750_v15  ;;  %v1001_v19 = vld [vmem:[#allocation7 + $0x30] sm:$0xff] }
 0x738   :  { %2473 = vmatprep.mubr.msk.f32.mxu1 %vm3165_vm7, %v755_v28  ;;  %vm3180_vm7 = vmmov %vm3173_vm0 }
 0x739   :  { %2474 = vmatmul.mubr.msk.f32.vlgmr.msra.gmra.mxu1 %vm3166_vm9, %v756_v29  ;;  %vm3181_vm9 = vmmov %vm3173_vm0 }
 0x73a   :  { %2488 = vmatpush3.msra.mxu1 %v1014_v4  ;;  %v1141_v4 = vld [vmem:[#allocation4 + $0x88] sm:$0xff] }
 0x73b   :  { %2489 = vmatprep.subr.mxu1 %v1013_v5 }
 0x73c   :  { %2490 = vmatpush3.msra.mxu1 %v1013_v5  ;;  %v1140_v5 = vld [vmem:[#allocation4 + $0x50] sm:$0xff] }
 0x73d   :  { %2491 = vmatprep.subr.mxu1 %v1012_v6 }
 0x73e   :  { %2492 = vmatpush3.msra.mxu1 %v1012_v6  ;;  %v1139_v6 = vld [vmem:[#allocation4 + $0x18] sm:$0xff] }
 0x73f   :  { %2493 = vmatprep.subr.mxu1 %v1011_v0 }
 0x740   :  { %2494 = vmatpush3.msra.mxu1 %v1011_v0 }
 0x741   :  { %2495 = vmatprep.subr.mxu1 %v1010_v7 }
 0x742   :  { %2496 = vmatpush3.msra.mxu1 %v1010_v7 }
 0x743   :  { %2497 = vmatprep.subr.mxu1 %v1009_v8 }
 0x744   :  { %2498 = vmatpush3.msra.mxu1 %v1009_v8 }
 0x745   :  { %2499 = vmatprep.subr.mxu1 %v1008_v9 }
 0x746   :  { %2500 = vmatpush3.msra.mxu1 %v1008_v9 }
 0x747   :  { %2501 = vmatprep.subr.mxu1 %v1007_v10 }
 0x748   :  { %2502 = vmatpush3.msra.mxu1 %v1007_v10 }
 0x749   :  { %2503 = vmatprep.subr.mxu1 %v1006_v11 }
 0x74a   :  { %2504 = vmatpush3.msra.mxu1 %v1006_v11 }
 0x74b   :  { %2505 = vmatprep.subr.mxu1 %v1005_v12 }
 0x74c   :  { %2506 = vmatpush3.msra.mxu1 %v1005_v12 }
 0x74d   :  { %2507 = vmatprep.subr.mxu1 %v1004_v13 }
 0x74e   :  { %2508 = vmatpush3.msra.mxu1 %v1004_v13  ;;  %v2246_v13 = vld [vmem:[#allocation9 + $0x8] ss:$0 sm:$0xff] }
 0x74f   :  { %2509 = vmatprep.subr.mxu1 %v1003_v16 }
 0x750   :  { %2510 = vmatpush3.msra.mxu1 %v1003_v16 }
 0x751   :  { %2511 = vmatprep.subr.mxu1 %v1002_v18 }
 0x752   :  { %2512 = vmatpush3.msra.mxu1 %v1002_v18 }
 0x753   :  { %2513 = vmatprep.subr.mxu1 %v1001_v19 }
 0x754   :  { %2514 = vmatpush3.msra.mxu1 %v1001_v19 }
 0x755   :  { %2515 = vmatprep.subr.mxu1 %v1000_v21 }
 0x756   :  { %2516 = vmatpush3.msra.mxu1 %v1000_v21 }
 0x757   :  { %2517 = vmatprep.subr.mxu1 %v999_v23 }
 0x758   :  { %2518 = vmatpush3.msra.mxu1 %v999_v23  ;;  %v2247_v23 = vld [vmem:[#allocation9 + $0x9] ss:$0 sm:$0xff] }
 0x7f9   :  { %v2475_v30 = vpop.f32.mrf.mxu1 }
 0x7fa   :  { %v843_v32 = vadd.f32 %v2475_v30, %v2906_v26 }
 0x7fb   :  { %v833_v33 = vpop.f32.mrf.mxu1 }
 0x7fc   :  { %v3016_v34 = vadd.f32 %v2239_v31, %v843_v32  ;;  %v842_v35 = vadd.f32 %v833_v33, %v2908_v27 }
 0x7fe   :  { %v3019_v36 = vadd.f32 %v2239_v31, %v842_v35  ;;  %v856_v37 = vsel %vm3167_vm10, %v3016_v34, 0.0  ;;  %vm3182_vm10 = vmmov %vm3173_vm0 }
 0x7ff   :  { %857 = vadd.xlane.f32.xlu1 %v856_v37 }
 0x800   :  { %v853_v38 = vsel %vm3168_vm11, %v3019_v36, 0.0  ;;  %vm3183_vm11 = vmmov %vm3173_vm0 }
 0x801   :  { %854 = vadd.xlane.f32.xlu0 %v853_v38 }
 0x888   :  { %v858_v39 = vpop.xlane.xlu1 %857 }
 0x889   :  { %v860_v40 = vmul.f32 0.03125, %v858_v39 }
 0x88a   :  { %v855_v41 = vpop.xlane.xlu0 %854 }
 0x88b   :  { %v859_v42 = vmul.f32 0.03125, %v855_v41  ;;  %v862_v26 = vsub.f32 %v3016_v34, %v860_v40 }
 0x88d   :  { %v861_v43 = vsub.f32 %v3019_v36, %v859_v42  ;;  %v864_v45 = vmul.f32 %v862_v26, %v862_v26 }
 0x88f   :  { %v863_v44 = vmul.f32 %v861_v43, %v861_v43  ;;  %v868_v46 = vsel %vm3170_vm13, %v864_v45, 0.0  ;;  %vm3185_vm13 = vmmov %vm3173_vm0 }
 0x891   :  { %v865_v27 = vsel %vm3169_vm12, %v863_v44, 0.0  ;;  %vm3184_vm12 = vmmov %vm3173_vm0 }
 0x892   :  { %866 = vadd.xlane.f32.xlu0 %v865_v27 }
 0x896   :  { %869 = vadd.xlane.f32.xlu0 %v868_v46 }
 0x91b   :  { %v867_v51 = vpop.xlane.xlu0 %866 }
 0x91c   :  { %v871_v52 = vmul.f32 0.03125, %v867_v51 }
 0x91e   :  { %v873_v53 = vadd.f32 1e-05, %v871_v52 }
 0x91f   :  { %v870_v54 = vpop.xlane.xlu0 %869 }
 0x920   :  { %2678 = vrsqrt.f32 %v873_v53  ;;  %v872_v55 = vmul.f32 0.03125, %v870_v54 }
 0x922   :  { %v874_v56 = vadd.f32 1e-05, %v872_v55 }
 0x924   :  { %2680 = vrsqrt.f32 %v874_v56 }
 0x92d   :  { %v2679_v57 = vpop.eup %2678 }
 0x92e   :  { %v877_v59 = vmul.f32 %v2679_v57, %v861_v43 }
 0x930   :  { %v883_v61 = vmul.f32 %v2240_v58, %v877_v59 }
 0x931   :  { %v2681_v62 = vpop.eup %2680 }
 0x932   :  { %v878_v63 = vmul.f32 %v2681_v62, %v862_v26  ;;  %v889_v1 = vadd.f32 %v2241_v60, %v883_v61 }
 0x934   :  { %v884_v2 = vmul.f32 %v2240_v58, %v878_v63  ;;  %2484 = vmatprep.mubr.msk.f32.mxu0 %vm3171_vm14, %v889_v1  ;;  %vm3186_vm14 = vmmov %vm3173_vm0 }
 0x936   :  { %v890_v3 = vadd.f32 %v2241_v60, %v884_v2 }
 0x938   :  { %2485 = vmatmul.mubr.msk.f32.vlgmr.msra.gmra.mxu0 %vm3172_vm15, %v890_v3  ;;  %v1142_v3 = vld [vmem:[#allocation4 + $0xc0] sm:$0xff]  ;;  %vm3187_vm15 = vmmov %vm3173_vm0 }
 0x939   :  { %2522 = vmatprep.subr.mxu0 %v1142_v3 }
 0x93a   :  { %2523 = vmatpush3.msra.mxu0 %v1142_v3 }
 0x93b   :  { %2524 = vmatprep.subr.mxu0 %v1141_v4 }
 0x93c   :  { %2525 = vmatpush3.msra.mxu0 %v1141_v4 }
 0x93d   :  { %2526 = vmatprep.subr.mxu0 %v1140_v5 }
 0x93e   :  { %2527 = vmatpush3.msra.mxu0 %v1140_v5 }
 0x93f   :  { %2528 = vmatprep.subr.mxu0 %v1139_v6 }
 0x940   :  { %2529 = vmatpush3.msra.mxu0 %v1139_v6 }
 0x9f8   :  { %v2486_v15 = vpop.f32.mrf.mxu0 }
 0x9f9   :  { %v978_v28 = vadd.f32 %v2486_v15, %v2242_v25 }
 0x9fa   :  { %v972_v29 = vpop.f32.mrf.mxu0 }
 0x9fb   :  { %v982_v30 = vmul.f32 %v978_v28, %v978_v28  ;;  %v973_v31 = vadd.f32 %v2242_v25, %v972_v29  ;;  %v2248_v29 = vld [vmem:[#allocation9 + $0xa] ss:$0 sm:$0xff] }
 0x9fd   :  { %v984_v32 = vmul.f32 %v982_v30, %v978_v28  ;;  %v981_v33 = vmul.f32 %v973_v31, %v973_v31 }
 0x9ff   :  { %v986_v35 = vmul.f32 0.044715, %v984_v32  ;;  %v983_v37 = vmul.f32 %v981_v33, %v973_v31 }
 0xa01   :  { %v988_v38 = vadd.f32 %v986_v35, %v978_v28  ;;  %v985_v39 = vmul.f32 0.044715, %v983_v37 }
 0xa03   :  { %v990_v40 = vmul.f32 0.7978846, %v988_v38  ;;  %v987_v41 = vadd.f32 %v985_v39, %v973_v31 }
 0xa05   :  { %2682 = vtanh.f32 %v990_v40  ;;  %v989_v42 = vmul.f32 0.7978846, %v987_v41 }
 0xa07   :  { %2684 = vtanh.f32 %v989_v42 }
 0xa12   :  { %v2683_v26 = vpop.eup %2682 }
 0xa13   :  { %v994_v43 = vadd.f32 1.0, %v2683_v26 }
 0xa14   :  { %v2685_v44 = vpop.eup %2684 }
 0xa15   :  { %v993_v27 = vadd.f32 1.0, %v2685_v44  ;;  %v996_v45 = vmul.f32 0.5, %v994_v43 }
 0xa17   :  { %v995_v46 = vmul.f32 0.5, %v993_v27  ;;  %v998_v48 = vmul.f32 %v996_v45, %v978_v28 }
 0xa19   :  { %v997_v47 = vmul.f32 %v995_v46, %v973_v31 }
 0xa1b   :  { %2519 = vmatprep.mubr.f32.mxu1 %v997_v47 }
 0xa1c   :  { %2520 = vmatmul.mubr.f32.vlgmr.msra.gmra.mxu1 %v998_v48 }
 0xadc   :  { %v2521_v49 = vpop.f32.mrf.mxu1 }
 0xadd   :  { %v1091_v51 = vadd.f32 %v2521_v49, %v3016_v34 }
 0xade   :  { %v1081_v52 = vpop.f32.mrf.mxu1 }
 0xadf   :  { %v3032_v53 = vadd.f32 %v2245_v50, %v1091_v51  ;;  %v1090_v54 = vadd.f32 %v1081_v52, %v3019_v36 }
 0xae1   :  { %v3035_v55 = vadd.f32 %v2245_v50, %v1090_v54  ;;  %v1104_v56 = vsel %vm3173_vm0, %v3032_v53, 0.0 }
 0xae2   :  { %1105 = vadd.xlane.f32.xlu0 %v1104_v56 }
 0xae3   :  { %v1101_v57 = vsel %vm3174_vm1, %v3035_v55, 0.0  ;;  %vm3188_vm1 = vmmov %vm3173_vm0 }
 0xae4   :  { %1102 = vadd.xlane.f32.xlu1 %v1101_v57 }
 0xb6b   :  { %v1106_v58 = vpop.xlane.xlu0 %1105 }
 0xb6c   :  { %v1108_v59 = vmul.f32 0.03125, %v1106_v58 }
 0xb6d   :  { %v1103_v60 = vpop.xlane.xlu1 %1102 }
 0xb6e   :  { %v1110_v34 = vsub.f32 %v3032_v53, %v1108_v59  ;;  %v1107_v61 = vmul.f32 0.03125, %v1103_v60 }
 0xb70   :  { %v1109_v62 = vsub.f32 %v3035_v55, %v1107_v61  ;;  %v1112_v63 = vmul.f32 %v1110_v34, %v1110_v34 }
 0xb72   :  { %v1116_v36 = vsel %vm3175_vm2, %v1112_v63, 0.0  ;;  %v1111_v1 = vmul.f32 %v1109_v62, %v1109_v62  ;;  %vm3189_vm2 = vmmov %vm3173_vm0 }
 0xb73   :  { %1117 = vadd.xlane.f32.xlu0 %v1116_v36 }
 0xb74   :  { %v1113_v2 = vsel %vm3176_vm3, %v1111_v1, 0.0  ;;  %vm2837_vm3 = vmmov 0  }
 0xb75   :  { %1114 = vadd.xlane.f32.xlu1 %v1113_v2 }
 0xbfc   :  { %v1118_v0 = vpop.xlane.xlu0 %1117 }
 0xbfd   :  { %v1120_v7 = vmul.f32 0.03125, %v1118_v0 }
 0xbfe   :  { %v1115_v8 = vpop.xlane.xlu1 %1114 }
 0xbff   :  { %v1122_v9 = vadd.f32 1e-05, %v1120_v7  ;;  %v1119_v10 = vmul.f32 0.03125, %v1115_v8 }
 0xc01   :  { %2686 = vrsqrt.f32 %v1122_v9  ;;  %v1121_v11 = vadd.f32 1e-05, %v1119_v10 }
 0xc03   :  { %2688 = vrsqrt.f32 %v1121_v11 }
 0xc0e   :  { %v2687_v12 = vpop.eup %2686 }
 0xc0f   :  { %v1126_v16 = vmul.f32 %v2687_v12, %v1110_v34 }
 0xc10   :  { %v2689_v18 = vpop.eup %2688 }
 0xc11   :  { %v1125_v19 = vmul.f32 %v2689_v18, %v1109_v62  ;;  %v1132_v21 = vmul.f32 %v2246_v13, %v1126_v16 }
 0xc13   :  { %v1131_v25 = vmul.f32 %v2246_v13, %v1125_v19  ;;  %v1138_v28 = vadd.f32 %v2247_v23, %v1132_v21 }
 0xc15   :  { %v1137_v15 = vadd.f32 %v2247_v23, %v1131_v25 }
 0xc17   :  { %2530 = vmatprep.mubr.msk.f32.mxu0 %vm3177_vm4, %v1137_v15  ;;  %vm2030_vm4 = vcmp.eq.s32.totalorder %v2887_v14, 0 }
 0xc18   :  { %2531 = vmatmul.mubr.msk.f32.vlgmr.msra.gmra.mxu0 %vm3178_vm5, %v1138_v28 }
 0xcd8   :  { %v2532_v30 = vpop.f32.mrf.mxu0 }
 0xcd9   :  { %v3047_v31 = vadd.f32 %v2532_v30, %v2248_v29 }
 0xcda   :  { %v1220_v32 = vpop.f32.mrf.mxu0 }
 0xcdb   :  { %v3049_v33 = vadd.f32 %v2248_v29, %v1220_v32  ;;  %1233 = vrot.lane.b32.xlu1 %v3047_v31, %s2830_s1 }
 0xcdd   :  { %1231 = vrot.lane.b32.xlu0 %v3049_v33, %s2830_s1  ;;  %2537 = vmatprep.mubr.msk.f32.mxu0 %vm346_vm8, %v3049_v33 }
 0xd4d   :  { %v1234_v35 = vpop.permute.xlu1 %1233 }
 0xd4e   :  { %2533 = vmatprep.subr.msk.mxu0 %vm346_vm8, %v1234_v35 }
 0xd4f   :  { %2534 = vmatpush3.xpose.msk.msra.mxu0 %vm346_vm8, %v1234_v35  ;;  %v1232_v37 = vpop.permute.xlu0 %1231 }
 0xd50   :  { %2535 = vmatprep.subr.msk.mxu0 %vm346_vm8, %v1232_v37 }
 0xd53   :  { %2536 = vmatpush3.xpose.msk.msra.mxu0 %vm346_vm8, %v1232_v37 }
 0xd56   :  { %2538 = vmatmul.mubr.msk.f32.vlgmr.msra.gmra.mxu0 %vm346_vm8, %v3047_v31 }
 0xe16   :  { %v2539_v38 = vpop.f32.mrf.mxu0 }
 0xe17   :  { %v1319_v39 = vmul.f32 0.25, %v2539_v38  ;;  %v1648_v38 = vld [vmem:[#allocation4 + $0xd0] sm:$0xff] }
 0xe18   :  { %v1309_v40 = vpop.f32.mrf.mxu0  ;;  %2561 = vmatprep.subr.mxu1 %v1648_v38 }
 0xe19   :  { %v1318_v41 = vmul.f32 0.25, %v1309_v40  ;;  %v1321_v42 = vadd.f32 %v1319_v39, %v2981_v20  ;;  %v1647_v39 = vld [vmem:[#allocation4 + $0x98] sm:$0xff]  ;;  %2562 = vmatpush3.msra.mxu1 %v1648_v38  ;;  %v1645_v40 = vld [vmem:[#allocation4 + $0x28] sm:$0xff]  ;;  %v1890_v38 = vld [vmem:[#allocation7 + $0x50] sm:$0xff] }
 0xe1a   :  { %2563 = vmatprep.subr.mxu1 %v1647_v39 }
 0xe1b   :  { %v1325_v26 = vsel %vm346_vm8, %v1321_v42, -inf  ;;  %v1320_v43 = vadd.f32 %v1318_v41, %v2983_v24  ;;  %2564 = vmatpush3.msra.mxu1 %v1647_v39  ;;  %v1889_v39 = vld [vmem:[#allocation7 + $0x38] sm:$0xff] }
 0xe1c   :  { %1326 = vmax.xlane.f32.xlu0 %v1325_v26 }
 0xe1d   :  { %v1322_v44 = vsel %vm346_vm8, %v1320_v43, -inf }
 0xe1e   :  { %1323 = vmax.xlane.f32.xlu1 %v1322_v44 }
 0xe2f   :  { %1346 = vrot.lane.b32.xlu1 %v3047_v31, %s2834_s23 }
 0xe33   :  { %1437 = vrot.lane.b32.xlu1 %v3047_v31, %s2832_s20 }
 0xe37   :  { %1435 = vrot.lane.b32.xlu1 %v3049_v33, %s2832_s20 }
 0xea5   :  { %v1327_v27 = vpop.xlane.xlu0 %1326 }
 0xea6   :  { %v1329_v45 = vsub.f32 %v1321_v42, %v1327_v27 }
 0xea7   :  { %v1324_v46 = vpop.xlane.xlu1 %1323 }
 0xea8   :  { %v1332_v47 = vmul.f32 1.442695, %v1329_v45  ;;  %v1328_v48 = vsub.f32 %v1320_v43, %v1324_v46  ;;  %v2265_v46 = vld [vmem:[#allocation9 + $0xb] ss:$0 sm:$0xff] }
 0xeaa   :  { %2690 = vpow2.f32 %v1332_v47  ;;  %v1330_v49 = vmul.f32 1.442695, %v1328_v48 }
 0xeab   :  { %v1347_v50 = vpop.permute.xlu1 %1346 }
 0xeac   :  { %2692 = vpow2.f32 %v1330_v49  ;;  %2540 = vmatprep.subr.mxu0 %v1347_v50 }
 0xead   :  { %2541 = vmatpush3.msra.mxu0 %v1347_v50 }
 0xeaf   :  { %v1438_v57 = vpop.permute.xlu1 %1437 }
 0xeb3   :  { %v1436_v58 = vpop.permute.xlu1 %1435 }
 0xeb7   :  { %v2691_v51 = vpop.eup %2690 }
 0xeb8   :  { %v1337_v52 = vsel %vm346_vm8, %v2691_v51, 0.0 }
 0xeb9   :  { %v2693_v54 = vpop.eup %2692  ;;  %1338 = vadd.xlane.f32.xlu0 %v1337_v52 }
 0xeba   :  { %v1334_v56 = vsel %vm346_vm8, %v2693_v54, 0.0 }
 0xebb   :  { %1335 = vadd.xlane.f32.xlu1 %v1334_v56 }
 0xecc   :  { %1433 = vrot.lane.b32.xlu1 %v3047_v31, %s2831_s4 }
 0xecf   :  { %1344 = vrot.lane.b32.xlu0 %v3049_v33, %s2834_s23 }
 0xed3   :  { %1431 = vrot.lane.b32.xlu0 %v3049_v33, %s2831_s4 }
 0xf42   :  { %v1339_v59 = vpop.xlane.xlu0 %1338 }
 0xf43   :  { %2694 = vrcp.f32 %v1339_v59 }
 0xf44   :  { %v1336_v60 = vpop.xlane.xlu1 %1335 }
 0xf45   :  { %2696 = vrcp.f32 %v1336_v60 }
 0xf46   :  { %v1345_v34 = vpop.permute.xlu0 %1344 }
 0xf47   :  { %2542 = vmatprep.subr.mxu0 %v1345_v34 }
 0xf48   :  { %2543 = vmatpush3.msra.mxu0 %v1345_v34  ;;  %v1434_v2 = vpop.permute.xlu1 %1433 }
 0xf49   :  { %2547 = vmatprep.subr.msk.mxu0 %vm346_vm8, %v1438_v57 }
 0xf4a   :  { %v1432_v1 = vpop.permute.xlu0 %1431 }
 0xf50   :  { %v2695_v61 = vpop.eup %2694 }
 0xf51   :  { %v1343_v36 = vmul.f32 %v2695_v61, %v2691_v51 }
 0xf52   :  { %v2697_v62 = vpop.eup %2696 }
 0xf53   :  { %v1341_v63 = vmul.f32 %v2697_v62, %v2693_v54 }
 0xf55   :  { %2544 = vmatprep.mubr.msk.f32.mxu0 %vm346_vm8, %v1341_v63  ;;  %v1782_v63 = vld [vmem:[#allocation4 + $0xb0] sm:$0xff] }
 0xf56   :  { %2545 = vmatmul.mubr.msk.f32.vlgmr.msra.gmra.mxu0 %vm346_vm8, %v1343_v36  ;;  %v1781_v36 = vld [vmem:[#allocation4 + $0x78] sm:$0xff] }
 0xf57   :  { %2548 = vmatpush3.xpose.msk.msra.mxu0 %vm346_vm8, %v1438_v57  ;;  %2551 = vmatprep.mubr.msk.f32.mxu0 %vm346_vm8, %v1432_v1  ;;  %v1780_v1 = vld [vmem:[#allocation4 + $0x40] sm:$0xff] }
 0xf58   :  { %2549 = vmatprep.subr.msk.mxu0 %vm346_vm8, %v1436_v58 }
 0xf5b   :  { %2550 = vmatpush3.xpose.msk.msra.mxu0 %vm346_vm8, %v1436_v58 }
 0xf5e   :  { %2552 = vmatmul.mubr.msk.f32.vlgmr.msra.gmra.mxu0 %vm346_vm8, %v1434_v2  ;;  %v1779_v2 = vld [vmem:[#allocation4 + $0x8] sm:$0xff] }
0x1016   :  { %v3089_v3 = vpop.f32.mrf.mxu0 }
0x1018   :  { %v1422_v4 = vpop.f32.mrf.mxu0 }
0x101e   :  { %v2553_v5 = vpop.f32.mrf.mxu0 }
0x101f   :  { %v1523_v6 = vmul.f32 0.25, %v2553_v5 }
0x1020   :  { %v1513_v0 = vpop.f32.mrf.mxu0 }
0x1021   :  { %v1522_v7 = vmul.f32 0.25, %v1513_v0  ;;  %v1525_v8 = vadd.f32 %v1523_v6, %v2981_v20 }
0x1023   :  { %v1529_v9 = vsel %vm346_vm8, %v1525_v8, -inf  ;;  %v1524_v10 = vadd.f32 %v1522_v7, %v2983_v24 }
0x1024   :  { %1530 = vmax.xlane.f32.xlu1 %v1529_v9  ;;  %v2266_v9 = vld [vmem:[#allocation9 + $0xc] ss:$0 sm:$0xff] }
0x1025   :  { %v1526_v11 = vsel %vm346_vm8, %v1524_v10, -inf }
0x1026   :  { %1527 = vmax.xlane.f32.xlu0 %v1526_v11  ;;  %v2267_v11 = vld [vmem:[#allocation9 + $0xd] ss:$0 sm:$0xff] }
0x1035   :  { %1550 = vrot.lane.b32.xlu1 %v3047_v31, %s2835_s24 }
0x10ad   :  { %v1531_v12 = vpop.xlane.xlu1 %1530 }
0x10ae   :  { %v1533_v13 = vsub.f32 %v1525_v8, %v1531_v12 }
0x10af   :  { %v1528_v16 = vpop.xlane.xlu0 %1527 }
0x10b0   :  { %v1536_v18 = vmul.f32 1.442695, %v1533_v13  ;;  %v1532_v19 = vsub.f32 %v1524_v10, %v1528_v16 }
0x10b1   :  { %v1551_v21 = vpop.permute.xlu1 %1550 }
0x10b2   :  { %2698 = vpow2.f32 %v1536_v18  ;;  %v1534_v23 = vmul.f32 1.442695, %v1532_v19  ;;  %2554 = vmatprep.subr.mxu0 %v1551_v21 }
0x10b3   :  { %2555 = vmatpush3.msra.mxu0 %v1551_v21 }
0x10b4   :  { %2700 = vpow2.f32 %v1534_v23  ;;  %v1902_v23 = vld [vmem:[#allocation7 + $0x170] sm:$0xff] }
0x10bf   :  { %v2699_v20 = vpop.eup %2698 }
0x10c0   :  { %v1541_v24 = vsel %vm346_vm8, %v2699_v20, 0.0 }
0x10c1   :  { %v2701_v25 = vpop.eup %2700  ;;  %1542 = vadd.xlane.f32.xlu0 %v1541_v24  ;;  %v1900_v24 = vld [vmem:[#allocation7 + $0x140] sm:$0xff] }
0x10c2   :  { %v1538_v15 = vsel %vm346_vm8, %v2701_v25, 0.0 }
0x10c5   :  { %1539 = vadd.xlane.f32.xlu0 %v1538_v15  ;;  %v1898_v15 = vld [vmem:[#allocation7 + $0x110] sm:$0xff] }
0x10db   :  { %1548 = vrot.lane.b32.xlu0 %v3049_v33, %s2835_s24  ;;  %v1646_v33 = vld [vmem:[#allocation4 + $0x60] sm:$0xff] }
0x10dc   :  { %2565 = vmatprep.subr.mxu1 %v1646_v33 }
0x10dd   :  { %2566 = vmatpush3.msra.mxu1 %v1646_v33  ;;  %v1888_v33 = vld [vmem:[#allocation7 + $0x20] sm:$0xff] }
0x10de   :  { %2567 = vmatprep.subr.mxu1 %v1645_v40 }
0x10df   :  { %2568 = vmatpush3.msra.mxu1 %v1645_v40  ;;  %v1887_v40 = vld [vmem:[#allocation7 + $0x8] sm:$0xff] }
0x10e0   :  { %2583 = vmatprep.subr.mxu1 %v1902_v23 }
0x114a   :  { %v1543_v28 = vpop.xlane.xlu0 %1542 }
0x114b   :  { %2702 = vrcp.f32 %v1543_v28  ;;  %v1897_v28 = vld [vmem:[#allocation7 + $0xf8] sm:$0xff] }
0x114e   :  { %v1540_v29 = vpop.xlane.xlu0 %1539 }
0x114f   :  { %2704 = vrcp.f32 %v1540_v29  ;;  %v1896_v29 = vld [vmem:[#allocation7 + $0xe0] sm:$0xff] }
0x1152   :  { %v1549_v30 = vpop.permute.xlu0 %1548 }
0x1153   :  { %2556 = vmatprep.subr.mxu0 %v1549_v30 }
0x1154   :  { %2557 = vmatpush3.msra.mxu0 %v1549_v30  ;;  %v1895_v30 = vld [vmem:[#allocation7 + $0xc8] sm:$0xff] }
0x1155   :  { %2572 = vmatprep.subr.mxu0 %v1782_v63 }
0x1158   :  { %v2703_v31 = vpop.eup %2702 }
0x1159   :  { %v1547_v37 = vmul.f32 %v2703_v31, %v2699_v20  ;;  %v1901_v20 = vld [vmem:[#allocation7 + $0x158] sm:$0xff]  ;;  %v1894_v31 = vld [vmem:[#allocation7 + $0xb0] sm:$0xff] }
0x115c   :  { %v2705_v32 = vpop.eup %2704 }
0x115d   :  { %v1545_v35 = vmul.f32 %v2705_v32, %v2701_v25  ;;  %v1899_v25 = vld [vmem:[#allocation7 + $0x128] sm:$0xff]  ;;  %v1893_v32 = vld [vmem:[#allocation7 + $0x98] sm:$0xff] }
0x115f   :  { %2558 = vmatprep.mubr.msk.f32.mxu0 %vm346_vm8, %v1545_v35  ;;  %v1892_v35 = vld [vmem:[#allocation7 + $0x80] sm:$0xff] }
0x1160   :  { %2559 = vmatmul.mubr.msk.f32.vlgmr.msra.gmra.mxu0 %vm346_vm8, %v1547_v37  ;;  %v1891_v37 = vld [vmem:[#allocation7 + $0x68] sm:$0xff] }
0x1161   :  { %2573 = vmatpush3.msra.mxu0 %v1782_v63 }
0x1162   :  { %2574 = vmatprep.subr.mxu0 %v1781_v36 }
0x1163   :  { %2575 = vmatpush3.msra.mxu0 %v1781_v36  ;;  %v2271_v36 = vld [vmem:[#allocation9 + $0xf] ss:$0 sm:$0xff] }
0x1164   :  { %2576 = vmatprep.subr.mxu0 %v1780_v1 }
0x1165   :  { %2577 = vmatpush3.msra.mxu0 %v1780_v1 }
0x1166   :  { %2578 = vmatprep.subr.mxu0 %v1779_v2 }
0x1167   :  { %2579 = vmatpush3.msra.mxu0 %v1779_v2 }
0x1168   :  { %2618 = vmatprep.subr.mxu0 %v2829_v22 }
0x1220   :  { %v2560_v41 = vpop.f32.mrf.mxu0 }
0x1222   :  { %v1626_v42 = vpop.f32.mrf.mxu0 }
0x1223   :  { %1637 = vrot.lane.b32.xlu1 %v1626_v42, %s2836_s0 }
0x1227   :  { %1639 = vrot.lane.b32.xlu1 %v2560_v41, %s2836_s0  ;;  %v2268_v41 = vld [vmem:[#allocation9 + $0xe] ss:$0 sm:$0xff] }
0x1295   :  { %v1638_v26 = vpop.permute.xlu1 %1637 }
0x1296   :  { %v1643_v43 = vsel %vm346_vm8, %v1422_v4, %v1638_v26 }
0x1297   :  { %2569 = vmatprep.mubr.msk.f32.mxu1 %vm3179_vm6, %v1643_v43  ;;  %vm2038_vm6 = vcmp.eq.s32.totalorder %v2887_v14, 1  ;;  %v2120_v14 = vld [vmem:[#allocation4 + $0xd8] sm:$0xff] }
0x1299   :  { %v1640_v44 = vpop.permute.xlu1 %1639 }
0x129a   :  { %v1644_v27 = vsel %vm346_vm8, %v3089_v3, %v1640_v44 }
0x129b   :  { %2570 = vmatmul.mubr.msk.f32.vlgmr.msra.gmra.mxu1 %vm3180_vm7, %v1644_v27 }
0x129c   :  { %2584 = vmatpush3.msra.mxu1 %v1902_v23 }
0x129d   :  { %2585 = vmatprep.subr.mxu1 %v1901_v20 }
0x129e   :  { %2586 = vmatpush3.msra.mxu1 %v1901_v20 }
0x129f   :  { %2587 = vmatprep.subr.mxu1 %v1900_v24 }
0x12a0   :  { %2588 = vmatpush3.msra.mxu1 %v1900_v24 }
0x12a1   :  { %2589 = vmatprep.subr.mxu1 %v1899_v25 }
0x12a2   :  { %2590 = vmatpush3.msra.mxu1 %v1899_v25  ;;  %v2031_v25 = vstv %s3194_s26 }
0x12a3   :  { %2591 = vmatprep.subr.mxu1 %v1898_v15  ;;  %vm2032_vm5 = vcmp.eq.s32.totalorder %v2893_v17, %v2031_v25 }
0x12a4   :  { %2592 = vmatpush3.msra.mxu1 %v1898_v15  ;;  %v2039_v15 = vstv %s2037_s27 }
0x12a5   :  { %2593 = vmatprep.subr.mxu1 %v1897_v28  ;;  %vm2040_vm7 = vcmp.eq.s32.totalorder %v2893_v17, %v2039_v15  ;;  %v2119_v17 = vld [vmem:[#allocation4 + $0xa0] sm:$0xff] }
0x12a6   :  { %2594 = vmatpush3.msra.mxu1 %v1897_v28 }
0x12a7   :  { %2595 = vmatprep.subr.mxu1 %v1896_v29 }
0x12a8   :  { %2596 = vmatpush3.msra.mxu1 %v1896_v29  ;;  %v2272_v29 = vld [vmem:[#allocation9 + $0x10] ss:$0 sm:$0xff] }
0x12a9   :  { %2597 = vmatprep.subr.mxu1 %v1895_v30 }
0x12aa   :  { %2598 = vmatpush3.msra.mxu1 %v1895_v30 }
0x12ab   :  { %2599 = vmatprep.subr.mxu1 %v1894_v31 }
0x12ac   :  { %2600 = vmatpush3.msra.mxu1 %v1894_v31 }
0x12ad   :  { %2601 = vmatprep.subr.mxu1 %v1893_v32 }
0x12ae   :  { %2602 = vmatpush3.msra.mxu1 %v1893_v32  ;;  %v2273_v32 = vld [vmem:[#allocation9 + $0x11] ss:$0 sm:$0xff] }
0x12af   :  { %2603 = vmatprep.subr.mxu1 %v1892_v35 }
0x12b0   :  { %2604 = vmatpush3.msra.mxu1 %v1892_v35 }
0x12b1   :  { %2605 = vmatprep.subr.mxu1 %v1891_v37 }
0x12b2   :  { %2606 = vmatpush3.msra.mxu1 %v1891_v37 }
0x12b3   :  { %2607 = vmatprep.subr.mxu1 %v1890_v38 }
0x12b4   :  { %2608 = vmatpush3.msra.mxu1 %v1890_v38 }
0x12b5   :  { %2609 = vmatprep.subr.mxu1 %v1889_v39 }
0x12b6   :  { %2610 = vmatpush3.msra.mxu1 %v1889_v39 }
0x12b7   :  { %2611 = vmatprep.subr.mxu1 %v1888_v33 }
0x12b8   :  { %2612 = vmatpush3.msra.mxu1 %v1888_v33 }
0x12b9   :  { %2613 = vmatprep.subr.mxu1 %v1887_v40 }
0x12ba   :  { %2614 = vmatpush3.msra.mxu1 %v1887_v40 }
0x135b   :  { %v2571_v45 = vpop.f32.mrf.mxu1 }
0x135c   :  { %v1731_v47 = vadd.f32 %v2571_v45, %v3032_v53 }
0x135d   :  { %v1721_v48 = vpop.f32.mrf.mxu1 }
0x135e   :  { %v3111_v49 = vadd.f32 %v2265_v46, %v1731_v47  ;;  %v1730_v50 = vadd.f32 %v1721_v48, %v3035_v55 }
0x1360   :  { %v3114_v51 = vadd.f32 %v2265_v46, %v1730_v50  ;;  %v1744_v52 = vsel %vm3181_vm9, %v3111_v49, 0.0  ;;  %vm2033_vm9 = vmand %vm2030_vm4, %vm2032_vm5 }
0x1361   :  { %1745 = vadd.xlane.f32.xlu1 %v1744_v52 }
0x1362   :  { %v1741_v54 = vsel %vm3182_vm10, %v3114_v51, 0.0  ;;  %vm2041_vm10 = vmand %vm2038_vm6, %vm2040_vm7 }
0x1363   :  { %1742 = vadd.xlane.f32.xlu0 %v1741_v54 }
0x13ea   :  { %v1746_v56 = vpop.xlane.xlu1 %1745 }
0x13eb   :  { %v1748_v57 = vmul.f32 0.03125, %v1746_v56 }
0x13ec   :  { %v1743_v58 = vpop.xlane.xlu0 %1742 }
0x13ed   :  { %v1747_v59 = vmul.f32 0.03125, %v1743_v58  ;;  %v1750_v53 = vsub.f32 %v3111_v49, %v1748_v57 }
0x13ef   :  { %v1749_v60 = vsub.f32 %v3114_v51, %v1747_v59  ;;  %v1752_v61 = vmul.f32 %v1750_v53, %v1750_v53 }
0x13f1   :  { %v1751_v34 = vmul.f32 %v1749_v60, %v1749_v60  ;;  %v1756_v62 = vsel %vm3184_vm12, %v1752_v61, 0.0  ;;  %vm2199_vm12 = vcmask 33792  }
0x13f3   :  { %v1753_v55 = vsel %vm3183_vm11, %v1751_v34, 0.0  ;;  %vm2042_vm11 = vmor %vm2033_vm9, %vm2041_vm10 }
0x13f4   :  { %1754 = vadd.xlane.f32.xlu0 %v1753_v55  ;;  %v2043_v40 = vsel %vm2042_vm11, 1.0, %v2829_v22 }
0x13f8   :  { %1757 = vadd.xlane.f32.xlu0 %v1756_v62 }
0x147d   :  { %v1755_v3 = vpop.xlane.xlu0 %1754 }
0x147e   :  { %v1759_v4 = vmul.f32 0.03125, %v1755_v3 }
0x1480   :  { %v1761_v5 = vadd.f32 1e-05, %v1759_v4 }
0x1481   :  { %v1758_v6 = vpop.xlane.xlu0 %1757 }
0x1482   :  { %2706 = vrsqrt.f32 %v1761_v5  ;;  %v1760_v0 = vmul.f32 0.03125, %v1758_v6 }
0x1484   :  { %v1762_v7 = vadd.f32 1e-05, %v1760_v0 }
0x1486   :  { %2708 = vrsqrt.f32 %v1762_v7 }
0x148f   :  { %v2707_v8 = vpop.eup %2706 }
0x1490   :  { %v1765_v10 = vmul.f32 %v2707_v8, %v1749_v60 }
0x1492   :  { %v1771_v12 = vmul.f32 %v2266_v9, %v1765_v10 }
0x1493   :  { %v2709_v13 = vpop.eup %2708 }
0x1494   :  { %v1766_v16 = vmul.f32 %v2709_v13, %v1750_v53  ;;  %v1777_v18 = vadd.f32 %v2267_v11, %v1771_v12 }
0x1496   :  { %v1772_v19 = vmul.f32 %v2266_v9, %v1766_v16  ;;  %2580 = vmatprep.mubr.msk.f32.mxu0 %vm3185_vm13, %v1777_v18 }
0x1498   :  { %v1778_v21 = vadd.f32 %v2267_v11, %v1772_v19 }
0x149a   :  { %2581 = vmatmul.mubr.msk.f32.vlgmr.msra.gmra.mxu0 %vm3186_vm14, %v1778_v21 }
0x149b   :  { %2622 = vmatprep.mubr.msk.f32.mxu0 %vm2837_vm3, %v2829_v22 }
0x155a   :  { %v2582_v42 = vpop.f32.mrf.mxu0 }
0x155b   :  { %v1866_v26 = vadd.f32 %v2582_v42, %v2268_v41  ;;  %v2117_v42 = vld [vmem:[#allocation4 + $0x30] sm:$0xff] }
0x155c   :  { %v1860_v43 = vpop.f32.mrf.mxu0 }
0x155d   :  { %v1870_v44 = vmul.f32 %v1866_v26, %v1866_v26  ;;  %v1861_v27 = vadd.f32 %v2268_v41, %v1860_v43  ;;  %v2118_v41 = vld [vmem:[#allocation4 + $0x68] sm:$0xff] }
0x155f   :  { %v1872_v45 = vmul.f32 %v1870_v44, %v1866_v26  ;;  %v1869_v46 = vmul.f32 %v1861_v27, %v1861_v27  ;;  %v2277_v44 = vld [vmem:[#allocation9 + $0x12] ss:$0 sm:$0xff] }
0x1561   :  { %v1874_v47 = vmul.f32 0.044715, %v1872_v45  ;;  %v1871_v48 = vmul.f32 %v1869_v46, %v1861_v27 }
0x1563   :  { %v1876_v50 = vadd.f32 %v1874_v47, %v1866_v26  ;;  %v1873_v52 = vmul.f32 0.044715, %v1871_v48 }
0x1565   :  { %v1878_v54 = vmul.f32 0.7978846, %v1876_v50  ;;  %v1875_v56 = vadd.f32 %v1873_v52, %v1861_v27 }
0x1567   :  { %2710 = vtanh.f32 %v1878_v54  ;;  %v1877_v57 = vmul.f32 0.7978846, %v1875_v56 }
0x1569   :  { %2712 = vtanh.f32 %v1877_v57 }
0x1574   :  { %v2711_v58 = vpop.eup %2710 }
0x1575   :  { %v1882_v59 = vadd.f32 1.0, %v2711_v58 }
0x1576   :  { %v2713_v53 = vpop.eup %2712 }
0x1577   :  { %v1881_v60 = vadd.f32 1.0, %v2713_v53  ;;  %v1884_v34 = vmul.f32 0.5, %v1882_v59 }
0x1579   :  { %v1883_v55 = vmul.f32 0.5, %v1881_v60  ;;  %v1886_v62 = vmul.f32 %v1884_v34, %v1866_v26 }
0x157b   :  { %v1885_v61 = vmul.f32 %v1883_v55, %v1861_v27 }
0x157d   :  { %2615 = vmatprep.mubr.f32.mxu1 %v1885_v61 }
0x157e   :  { %2616 = vmatmul.mubr.f32.vlgmr.msra.gmra.mxu1 %v1886_v62 }
0x163e   :  { %v2617_v63 = vpop.f32.mrf.mxu1 }
0x163f   :  { %v1979_v1 = vadd.f32 %v2617_v63, %v3111_v49 }
0x1640   :  { %v1969_v2 = vpop.f32.mrf.mxu1 }
0x1641   :  { %v1978_v3 = vadd.f32 %v1969_v2, %v3114_v51  ;;  %v1986_v4 = vadd.f32 %v2271_v36, %v1979_v1 }
0x1643   :  { %v1992_v5 = vsel %vm3187_vm15, %v1986_v4, 0.0  ;;  %v1985_v6 = vadd.f32 %v2271_v36, %v1978_v3 }
0x1644   :  { %1993 = vadd.xlane.f32.xlu1 %v1992_v5 }
0x1645   :  { %v1989_v0 = vsel %vm3173_vm0, %v1985_v6, 0.0 }
0x1646   :  { %1990 = vadd.xlane.f32.xlu0 %v1989_v0 }
0x16cd   :  { %v1994_v7 = vpop.xlane.xlu1 %1993 }
0x16ce   :  { %v1996_v8 = vmul.f32 0.03125, %v1994_v7 }
0x16cf   :  { %v1991_v9 = vpop.xlane.xlu0 %1990 }
0x16d0   :  { %v1998_v10 = vsub.f32 %v1986_v4, %v1996_v8  ;;  %v1995_v11 = vmul.f32 0.03125, %v1991_v9 }
0x16d2   :  { %v1997_v12 = vsub.f32 %v1985_v6, %v1995_v11  ;;  %v2000_v49 = vmul.f32 %v1998_v10, %v1998_v10 }
0x16d4   :  { %v2004_v13 = vsel %vm3188_vm1, %v2000_v49, 0.0  ;;  %v1999_v51 = vmul.f32 %v1997_v12, %v1997_v12 }
0x16d5   :  { %2005 = vadd.xlane.f32.xlu1 %v2004_v13 }
0x16d6   :  { %v2001_v16 = vsel %vm3189_vm2, %v1999_v51, 0.0 }
0x16d7   :  { %2002 = vadd.xlane.f32.xlu0 %v2001_v16 }
0x175e   :  { %v2006_v18 = vpop.xlane.xlu1 %2005 }
0x175f   :  { %v2008_v19 = vmul.f32 0.03125, %v2006_v18 }
0x1760   :  { %v2003_v21 = vpop.xlane.xlu0 %2002 }
0x1761   :  { %v2010_v23 = vadd.f32 1e-05, %v2008_v19  ;;  %v2007_v20 = vmul.f32 0.03125, %v2003_v21 }
0x1763   :  { %2714 = vrsqrt.f32 %v2010_v23  ;;  %v2009_v24 = vadd.f32 1e-05, %v2007_v20 }
0x1765   :  { %2716 = vrsqrt.f32 %v2009_v24 }
0x1770   :  { %v2715_v28 = vpop.eup %2714 }
0x1771   :  { %v2014_v30 = vmul.f32 %v2715_v28, %v1998_v10 }
0x1772   :  { %v2717_v31 = vpop.eup %2716 }
0x1773   :  { %v2020_v35 = vmul.f32 %v2272_v29, %v2014_v30  ;;  %v2013_v37 = vmul.f32 %v2717_v31, %v1997_v12 }
0x1775   :  { %v2026_v38 = vadd.f32 %v2273_v32, %v2020_v35  ;;  %v2019_v39 = vmul.f32 %v2272_v29, %v2013_v37 }
0x1777   :  { %2619 = vmatpush3.msra.mxu0 %v2026_v38  ;;  %v2025_v33 = vadd.f32 %v2273_v32, %v2019_v39 }
0x1778   :  { %2620 = vmatprep.subr.mxu0 %v2829_v22 }
0x1779   :  { %2621 = vmatpush3.msra.mxu0 %v2025_v33 }
0x177a   :  { %2623 = vmatmul.mubr.msk.f32.vlgmr.msra.gmra.mxu0 %vm346_vm8, %v2043_v40  ;;  %2625 = vmatprep.subr.mxu0 %v2829_v22  ;;  %vm3190_vm8 = vmmov %vm3173_vm0 }
0x177b   :  { %2626 = vmatpush3.msra.mxu0 %v2120_v14  ;;  %2633 = vmatprep.mubr.msk.f32.mxu0 %vm2837_vm3, %v2829_v22 }
0x177c   :  { %2627 = vmatprep.subr.mxu0 %v2829_v22 }
0x177d   :  { %2628 = vmatpush3.msra.mxu0 %v2119_v17 }
0x177e   :  { %2629 = vmatprep.subr.mxu0 %v2829_v22 }
0x177f   :  { %2630 = vmatpush3.msra.mxu0 %v2118_v41 }
0x1780   :  { %2631 = vmatprep.subr.mxu0 %v2829_v22 }
0x1781   :  { %2632 = vmatpush3.msra.mxu0 %v2117_v42 }
0x183a   :  { %v2113_v26 = vpop.f32.mrf.mxu0 }
0x183b   :  { %2634 = vmatmul.mubr.msk.f32.vlgmr.msra.gmra.mxu0 %vm3190_vm8, %v2113_v26 }
0x183c   :  { %v2624_v43 = vpop.f32.mrf.mxu0 }
0x18fb   :  { %v2195_v27 = vpop.f32.mrf.mxu0 }
0x18fc   :  { %v2196_v45 = vadd.f32 %v2277_v44, %v2195_v27 }
0x18fd   :  { %v2635_v46 = vpop.f32.mrf.mxu0 }
0x18fe   :  { %2200 = vst.msk [vmem:[#allocation10] sm:$0x3] %vm2199_vm12, %v2196_v45 }
0x18ff   :  { %2801 = shalt.err (!%p2798_p12)
}
0x1900   :  { %2210 = dma.vmem_to_hbm [thread:$0]  %s2208_s29, 32, %s3159_s5, [#allocation6]  }
0x1901   :  { %2816 = dma.done.wait [#allocation6], 32  }
0x1902   :  { %2817 = vsyncadd [#allocation6], 4294967264 }
0x1903   :  { %2214 = vsyncpa [#allocation5], 1 }
0x1904   :  { %2215 = vsyncpa [#allocation8], 1 }
0x1905   :  { %2216 = vsyncpa [#allocation6], 1 }

</bundles_post_ra>
